<compile_context>
chip_gen: v6e
topology: v6e:2x2x1
jax: 0.10.0
libtpu: 0.0.40
codegen_flags: <defaults>
</compile_context>

<pallas_src>
import jax
import jax.numpy as jnp
from jax import lax
from jax.experimental import pallas as pl
from jax.experimental.pallas import tpu as pltpu


LANE = 128


def _round_up(x, m):
    return (x + m - 1) // m * m


def _pad_axis(a, axis, target):
    if a.shape[axis] == target:
        return a
    cfg = [(0, 0)] * a.ndim
    cfg[axis] = (0, target - a.shape[axis])
    return jnp.pad(a, cfg)


# ----------------------------------------------------------------------------
# Kernel factory: one image per grid step; spatial dims flattened to
# M = H * (W + 2) rows (Wrow = W + 2 includes the 3x3 left/right halo).
# ----------------------------------------------------------------------------
def _make_bottleneck_kernel(H, W):
    Wrow = W + 2
    M = H * Wrow
    head = Wrow + 1          # scratch rows before the stage-1 interior store

    def kernel(x_ref, mask_ref, w1_ref, b1_ref, w2_ref, b2_ref,
               w3_ref, b3_ref, out_ref, pad_ref):
        S, Wp = pad_ref.shape

        # Zero only the halo head/tail of the flat padded scratch (cheap; the
        # interior is fully overwritten every step, so each grid step is
        # self-contained and the batch axis can be megacore-parallel).
        pad_ref[0:head, :] = jnp.zeros((head, Wp), pad_ref.dtype)
        pad_ref[head + M:S, :] = jnp.zeros((S - head - M, Wp), pad_ref.dtype)

        x2d = x_ref[...]                                     # (M, Cp) bf16

        # ---- stage 1: 1x1 conv (BN scale pre-folded) + bias + ReLU -------
        y1 = jnp.dot(x2d, w1_ref[...], preferred_element_type=jnp.float32)
        y1 = jnp.maximum(y1 + b1_ref[...], 0.0) * mask_ref[...]  # zero halo cols
        pad_ref[head:head + M, :] = y1.astype(pad_ref.dtype)

        # ---- stage 2: 3x3 conv (pad=1, stride=1) as 9 shifted whole-plane
        #      matmuls over the flat padded scratch, f32 accumulation -------
        acc = jnp.zeros((M, Wp), jnp.float32)
        for dy in range(3):
            for dx in range(3):
                base = dy * Wrow + dx
                tap = pad_ref[base:base + M, :]              # (M, Wp) bf16
                acc = acc + jnp.dot(tap, w2_ref[dy, dx],
                                    preferred_element_type=jnp.float32)
        y2 = jnp.maximum(acc + b2_ref[...], 0.0).astype(pad_ref.dtype)

        # ---- stage 3: 1x1 conv + bias + identity residual + ReLU ---------
        y3 = jnp.dot(y2, w3_ref[...], preferred_element_type=jnp.float32)
        y3 = y3 + b3_ref[...] + x2d.astype(jnp.float32)
        out_ref[...] = jnp.maximum(y3, 0.0).astype(out_ref.dtype)

    return kernel


# ----------------------------------------------------------------------------
# Host-side parameter prep: fold BN scale into conv weights (eval-mode BN).
# ----------------------------------------------------------------------------
def _fold_bn(params):
    return dict(
        w1=params["w1"] * params["s1"],        # (Cin, width) * (1, width)
        w2=params["w2"] * params["s2"],        # scales output channel (last dim)
        w3=params["w3"] * params["s3"],
        b1=params["b1"].astype(jnp.float32),
        b2=params["b2"].astype(jnp.float32),
        b3=params["b3"].astype(jnp.float32),
    )


# ----------------------------------------------------------------------------
# Wrapper
# ----------------------------------------------------------------------------
def bottleneck_pallas_nhwc(x_nhwc, params, compute_dtype=jnp.bfloat16):
    N, H, W, Cin = x_nhwc.shape
    width = params["w1"].shape[1]
    Cout = params["w3"].shape[1]
    # Identity residual only (stride=1, groups=1, dilation=1, no downsample).
    assert Cin == Cout, "identity residual requires Cin == Cout"

    Cp = _round_up(Cin, LANE)           # lane-dense channel padding
    Wp = _round_up(width, LANE)
    Wrow = W + 2
    M = H * Wrow
    S = _round_up(M + 2 * Wrow + 2, 16)  # flat padded scratch rows

    prep = _fold_bn(params)
    w1 = _pad_axis(_pad_axis(prep["w1"], 0, Cp), 1, Wp).astype(compute_dtype)
    w2 = _pad_axis(_pad_axis(prep["w2"], 2, Wp), 3, Wp).astype(compute_dtype)
    w3 = _pad_axis(_pad_axis(prep["w3"], 0, Wp), 1, Cp).astype(compute_dtype)
    b1 = _pad_axis(prep["b1"], 1, Wp)
    b2 = _pad_axis(prep["b2"], 1, Wp)
    b3 = _pad_axis(prep["b3"], 1, Cp)

    # Spatial halo pad along W, channel pad to Cp, flatten spatial dims.
    xp = jnp.pad(x_nhwc, ((0, 0), (0, 0), (1, 1), (0, Cp - Cin)))
    xf = xp.astype(compute_dtype).reshape(N, M, Cp)

    # 0/1 mask of valid (non-halo) columns in the flattened row axis.
    col = jnp.arange(Wrow)
    mask = jnp.tile(((col >= 1) & (col <= W)).astype(jnp.float32), H)
    mask = mask.reshape(M, 1)

    def const_spec(shape):
        rank = len(shape)
        return pl.BlockSpec(shape, lambda n, _r=rank: (0,) * _r)

    out_flat = pl.pallas_call(
        _make_bottleneck_kernel(H, W),
        out_shape=jax.ShapeDtypeStruct((N, M, Cp), jnp.float32),
        grid_spec=pltpu.PrefetchScalarGridSpec(
            num_scalar_prefetch=0,
            grid=(N,),
            in_specs=[
                pl.BlockSpec((None, M, Cp), lambda n: (n, 0, 0)),   # x (flat)
                const_spec((M, 1)),                                 # column mask
                const_spec((Cp, Wp)), const_spec((1, Wp)),          # w1, b1
                const_spec((3, 3, Wp, Wp)), const_spec((1, Wp)),    # w2, b2
                const_spec((Wp, Cp)), const_spec((1, Cp)),          # w3, b3
            ],
            out_specs=pl.BlockSpec((None, M, Cp), lambda n: (n, 0, 0)),
            scratch_shapes=[pltpu.VMEM((S, Wp), compute_dtype)],
        ),
        compiler_params=pltpu.CompilerParams(
            dimension_semantics=("parallel",)),     # v7x: batch across 2 TCs
    )(xf, mask, w1, b1, w2, b2, w3, b3)

    out = out_flat.reshape(N, H, Wrow, Cp)[:, :, 1:W + 1, :Cout]
    return out


def bottleneck_pallas_nchw(x_nchw, params, compute_dtype=jnp.bfloat16):
    # NOTE: in a full NHWC network keep activations NHWC and skip these
    # boundary transposes; they exist only to match the PyTorch NCHW API.
    x_nhwc = jnp.transpose(x_nchw, (0, 2, 3, 1))
    out_nhwc = bottleneck_pallas_nhwc(x_nhwc, params, compute_dtype)
    return jnp.transpose(out_nhwc, (0, 3, 1, 2))


# ----------------------------------------------------------------------------
# Deterministic synthetic parameters (shapes from Bottleneck.__init__)
# ----------------------------------------------------------------------------
def init_params(key, inplanes, planes, base_width=64, groups=1):
    expansion = 4
    width = int(planes * (base_width / 64.0)) * groups
    cout = planes * expansion
    eps = 1e-5
    ks = jax.random.split(key, 15)

    def bn_fold(kg, kb, km, kv, c):
        gamma = 1.0 + 0.1 * jax.random.normal(kg, (c,), jnp.float32)
        beta = 0.1 * jax.random.normal(kb, (c,), jnp.float32)
        mean = 0.1 * jax.random.normal(km, (c,), jnp.float32)
        var = jnp.abs(jax.random.normal(kv, (c,), jnp.float32)) + 0.5
        scale = gamma / jnp.sqrt(var + eps)
        bias = beta - mean * scale
        return scale.reshape(1, c), bias.reshape(1, c)

    w1 = 0.2 * jax.random.normal(ks[0], (inplanes, width), jnp.float32)     # 1x1
    w2 = 0.2 * jax.random.normal(ks[1], (3, 3, width, width), jnp.float32)  # 3x3 HWIO
    w3 = 0.2 * jax.random.normal(ks[2], (width, cout), jnp.float32)         # 1x1
    s1, b1 = bn_fold(ks[3], ks[4], ks[5], ks[6], width)
    s2, b2 = bn_fold(ks[7], ks[8], ks[9], ks[10], width)
    s3, b3 = bn_fold(ks[11], ks[12], ks[13], ks[14], cout)
    return dict(w1=w1, w2=w2, w3=w3, s1=s1, b1=b1, s2=s2, b2=b2, s3=s3, b3=b3)


# ----------------------------------------------------------------------------
# References
# ----------------------------------------------------------------------------
def _ref_prepared_nhwc(x_bf16, prep):
    """Mirror of the kernel math: folded BN, bf16 matmul inputs, f32 accum."""
    N, H, W, _ = x_bf16.shape
    w1 = prep["w1"].astype(jnp.bfloat16)
    w2 = prep["w2"].astype(jnp.bfloat16)
    w3 = prep["w3"].astype(jnp.bfloat16)
    y1 = jnp.einsum("nhwc,cd->nhwd", x_bf16, w1,
                    preferred_element_type=jnp.float32)
    y1 = jnp.maximum(y1 + prep["b1"], 0.0).astype(jnp.bfloat16)
    y1p = jnp.pad(y1, ((0, 0), (1, 1), (1, 1), (0, 0)))
    acc = jnp.zeros((N, H, W, w2.shape[-1]), jnp.float32)
    for dy in range(3):
        for dx in range(3):
            acc = acc + jnp.einsum("nhwc,cd->nhwd",
                                   y1p[:, dy:dy + H, dx:dx + W, :], w2[dy, dx],
                                   preferred_element_type=jnp.float32)
    y2 = jnp.maximum(acc + prep["b2"], 0.0).astype(jnp.bfloat16)
    y3 = jnp.einsum("nhwc,cd->nhwd", y2, w3,
                    preferred_element_type=jnp.float32) + prep["b3"]
    return jnp.maximum(y3 + x_bf16.astype(jnp.float32), 0.0)


def _ref_f32_nhwc(x, p):
    """Full-precision reference of the original module (unfolded BN)."""
    dn = ("NHWC", "HWIO", "NHWC")
    y = lax.conv_general_dilated(x, p["w1"][None, None], (1, 1), "VALID",
                                 dimension_numbers=dn)
    y = jnp.maximum(y * p["s1"] + p["b1"], 0.0)
    y = lax.conv_general_dilated(y, p["w2"], (1, 1), ((1, 1), (1, 1)),
                                 dimension_numbers=dn)
    y = jnp.maximum(y * p["s2"] + p["b2"], 0.0)
    y = lax.conv_general_dilated(y, p["w3"][None, None], (1, 1), "VALID",
                                 dimension_numbers=dn)
    y = y * p["s3"] + p["b3"]
    return jnp.maximum(y + x, 0.0)


if __name__ == "__main__":
    key = jax.random.PRNGKey(0)
    kx, kp = jax.random.split(key)

    # Small test config: planes=4 -> width=4, Cout = 4*4 = 16 = inplanes,
    # so the identity residual is valid (stride=1, downsample=None).
    N, inplanes, H, W = 2, 16, 8, 8
    planes = 4

    x_nchw = jax.random.normal(kx, (N, inplanes, H, W), jnp.float32)
    params = init_params(kp, inplanes, planes)

    out_nchw = bottleneck_pallas_nchw(x_nchw, params)
    jax.block_until_ready(out_nchw)
    assert out_nchw.shape == (N, planes * 4, H, W)

    out_nhwc = jnp.transpose(out_nchw, (0, 2, 3, 1))
    x_nhwc = jnp.transpose(x_nchw, (0, 2, 3, 1))

    # Tight check: identical math (folded BN, bf16 matmul inputs, f32 accum).
    ref_tight = _ref_prepared_nhwc(x_nhwc.astype(jnp.bfloat16), _fold_bn(params))
    err_tight = float(jnp.max(jnp.abs(out_nhwc - ref_tight)))
    assert err_tight < 5e-3, f"tight check failed: max err {err_tight}"

    # Loose sanity check vs the full-f32 unfolded-BN reference
    # (difference is only the bf16 cast of the matmul inputs).
    ref_f32 = _ref_f32_nhwc(x_nhwc, params)
    err_f32 = float(jnp.max(jnp.abs(out_nhwc - ref_f32)))
    assert err_f32 < 2.5e-1, f"f32 sanity check failed: max err {err_f32}"

    print("KERNEL_OK")
</pallas_src>

<mosaic_0001>
module attributes {stable_mosaic.version = 11 : i64} {
  func.func @kernel(%arg0: i32, %arg1: memref<1x80x128xbf16, #tpu.memory_space<vmem>>, %arg2: memref<80x1xf32, #tpu.memory_space<vmem>>, %arg3: memref<128x128xbf16, #tpu.memory_space<vmem>>, %arg4: memref<1x128xf32, #tpu.memory_space<vmem>>, %arg5: memref<3x3x128x128xbf16, #tpu.memory_space<vmem>>, %arg6: memref<1x128xf32, #tpu.memory_space<vmem>>, %arg7: memref<128x128xbf16, #tpu.memory_space<vmem>>, %arg8: memref<1x128xf32, #tpu.memory_space<vmem>>, %arg9: memref<1x80x128xf32, #tpu.memory_space<vmem>>, %arg10: memref<112x128xbf16, #tpu.memory_space<vmem>>) attributes {dimension_semantics = [#tpu.dimension_semantics<parallel>], iteration_bounds = array<i64: 2>, scalar_prefetch = 0 : i64, scratch_operands = 1 : i64, tpu.core_type = #tpu.core_type<tc>, window_params = [{transform_indices = @transform_0, window_bounds = array<i64: 1, 80, 128>}, {pipeline_mode = #tpu.pipeline_mode<synchronous>, transform_indices = @transform_1, window_bounds = array<i64: 80, 1>}, {pipeline_mode = #tpu.pipeline_mode<synchronous>, transform_indices = @transform_2, window_bounds = array<i64: 128, 128>}, {pipeline_mode = #tpu.pipeline_mode<synchronous>, transform_indices = @transform_3, window_bounds = array<i64: 1, 128>}, {pipeline_mode = #tpu.pipeline_mode<synchronous>, transform_indices = @transform_4, window_bounds = array<i64: 3, 3, 128, 128>}, {pipeline_mode = #tpu.pipeline_mode<synchronous>, transform_indices = @transform_5, window_bounds = array<i64: 1, 128>}, {pipeline_mode = #tpu.pipeline_mode<synchronous>, transform_indices = @transform_6, window_bounds = array<i64: 128, 128>}, {pipeline_mode = #tpu.pipeline_mode<synchronous>, transform_indices = @transform_7, window_bounds = array<i64: 1, 128>}, {transform_indices = @transform_8, window_bounds = array<i64: 1, 80, 128>}]} {
    %cst = arith.constant 0.000000e+00 : bf16
    %0 = vector.broadcast %cst : bf16 to vector<11x128xbf16>
    %c0 = arith.constant 0 : index
    %c0_0 = arith.constant 0 : index
    %1 = vector.load %arg10[%c0, %c0_0] : memref<112x128xbf16, #tpu.memory_space<vmem>>, vector<11x128xbf16>
    tpu.vector_store %arg10[%c0, %c0_0], %0 {strides = array<i32>} : memref<112x128xbf16, #tpu.memory_space<vmem>>, vector<11x128xbf16>,
    %cst_1 = arith.constant 0.000000e+00 : bf16
    %2 = vector.broadcast %cst_1 : bf16 to vector<21x128xbf16>
    %c91 = arith.constant 91 : index
    %c0_2 = arith.constant 0 : index
    %3 = vector.load %arg10[%c91, %c0_2] : memref<112x128xbf16, #tpu.memory_space<vmem>>, vector<21x128xbf16>
    tpu.vector_store %arg10[%c91, %c0_2], %2 {strides = array<i32>} : memref<112x128xbf16, #tpu.memory_space<vmem>>, vector<21x128xbf16>,
    %c0_3 = arith.constant 0 : index
    %c0_4 = arith.constant 0 : index
    %c0_5 = arith.constant 0 : index
    %4 = vector.load %arg1[%c0_3, %c0_4, %c0_5] : memref<1x80x128xbf16, #tpu.memory_space<vmem>>, vector<1x80x128xbf16>
    %5 = vector.shape_cast %4 : vector<1x80x128xbf16> to vector<80x128xbf16>
    %c0_6 = arith.constant 0 : index
    %c0_7 = arith.constant 0 : index
    %6 = vector.load %arg3[%c0_6, %c0_7] : memref<128x128xbf16, #tpu.memory_space<vmem>>, vector<128x128xbf16>
    %cst_8 = arith.constant dense<0.000000e+00> : vector<80x128xf32>
    %7 = tpu.matmul %5, %6, %cst_8 {dimension_numbers = #tpu.dot_dimension_numbers<[1], [0], [0], [1], [0, 0, 1, 1], [], []>} : vector<80x128xbf16>, vector<128x128xbf16>, vector<80x128xf32> -> vector<80x128xf32>
    %c0_9 = arith.constant 0 : index
    %c0_10 = arith.constant 0 : index
    %8 = vector.load %arg4[%c0_9, %c0_10] : memref<1x128xf32, #tpu.memory_space<vmem>>, vector<1x128xf32>
    %9 = vector.broadcast %8 : vector<1x128xf32> to vector<80x128xf32>
    %10 = arith.addf %7, %9 : vector<80x128xf32>
    %cst_11 = arith.constant 0.000000e+00 : f32
    %11 = vector.broadcast %cst_11 : f32 to vector<80x128xf32>
    %12 = arith.maximumf %10, %11 : vector<80x128xf32>
    %c0_12 = arith.constant 0 : index
    %c0_13 = arith.constant 0 : index
    %13 = vector.load %arg2[%c0_12, %c0_13] : memref<80x1xf32, #tpu.memory_space<vmem>>, vector<80x1xf32>
    %14 = vector.broadcast %13 : vector<80x1xf32> to vector<80x128xf32>
    %15 = arith.mulf %12, %14 : vector<80x128xf32>
    %16 = arith.truncf %15 : vector<80x128xf32> to vector<80x128xbf16>
    %c11 = arith.constant 11 : index
    %c0_14 = arith.constant 0 : index
    %17 = vector.load %arg10[%c11, %c0_14] : memref<112x128xbf16, #tpu.memory_space<vmem>>, vector<80x128xbf16>
    tpu.vector_store %arg10[%c11, %c0_14], %16 {strides = array<i32>} : memref<112x128xbf16, #tpu.memory_space<vmem>>, vector<80x128xbf16>,
    %cst_15 = arith.constant 0.000000e+00 : f32
    %18 = vector.broadcast %cst_15 : f32 to vector<80x128xf32>
    %c0_16 = arith.constant 0 : index
    %c0_17 = arith.constant 0 : index
    %19 = vector.load %arg10[%c0_16, %c0_17] : memref<112x128xbf16, #tpu.memory_space<vmem>>, vector<80x128xbf16>
    %c0_18 = arith.constant 0 : index
    %c0_19 = arith.constant 0 : index
    %c0_20 = arith.constant 0 : index
    %c0_21 = arith.constant 0 : index
    %20 = vector.load %arg5[%c0_18, %c0_19, %c0_20, %c0_21] : memref<3x3x128x128xbf16, #tpu.memory_space<vmem>>, vector<1x1x128x128xbf16>
    %21 = vector.shape_cast %20 : vector<1x1x128x128xbf16> to vector<128x128xbf16>
    %cst_22 = arith.constant dense<0.000000e+00> : vector<80x128xf32>
    %22 = tpu.matmul %19, %21, %cst_22 {dimension_numbers = #tpu.dot_dimension_numbers<[1], [0], [0], [1], [0, 0, 1, 1], [], []>} : vector<80x128xbf16>, vector<128x128xbf16>, vector<80x128xf32> -> vector<80x128xf32>
    %23 = arith.addf %18, %22 : vector<80x128xf32>
    %c1 = arith.constant 1 : index
    %c0_23 = arith.constant 0 : index
    %24 = vector.load %arg10[%c1, %c0_23] : memref<112x128xbf16, #tpu.memory_space<vmem>>, vector<80x128xbf16>
    %c0_24 = arith.constant 0 : index
    %c1_25 = arith.constant 1 : index
    %c0_26 = arith.constant 0 : index
    %c0_27 = arith.constant 0 : index
    %25 = vector.load %arg5[%c0_24, %c1_25, %c0_26, %c0_27] : memref<3x3x128x128xbf16, #tpu.memory_space<vmem>>, vector<1x1x128x128xbf16>
    %26 = vector.shape_cast %25 : vector<1x1x128x128xbf16> to vector<128x128xbf16>
    %cst_28 = arith.constant dense<0.000000e+00> : vector<80x128xf32>
    %27 = tpu.matmul %24, %26, %cst_28 {dimension_numbers = #tpu.dot_dimension_numbers<[1], [0], [0], [1], [0, 0, 1, 1], [], []>} : vector<80x128xbf16>, vector<128x128xbf16>, vector<80x128xf32> -> vector<80x128xf32>
    %28 = arith.addf %23, %27 : vector<80x128xf32>
    %c2 = arith.constant 2 : index
    %c0_29 = arith.constant 0 : index
    %29 = vector.load %arg10[%c2, %c0_29] : memref<112x128xbf16, #tpu.memory_space<vmem>>, vector<80x128xbf16>
    %c0_30 = arith.constant 0 : index
    %c2_31 = arith.constant 2 : index
    %c0_32 = arith.constant 0 : index
    %c0_33 = arith.constant 0 : index
    %30 = vector.load %arg5[%c0_30, %c2_31, %c0_32, %c0_33] : memref<3x3x128x128xbf16, #tpu.memory_space<vmem>>, vector<1x1x128x128xbf16>
    %31 = vector.shape_cast %30 : vector<1x1x128x128xbf16> to vector<128x128xbf16>
    %cst_34 = arith.constant dense<0.000000e+00> : vector<80x128xf32>
    %32 = tpu.matmul %29, %31, %cst_34 {dimension_numbers = #tpu.dot_dimension_numbers<[1], [0], [0], [1], [0, 0, 1, 1], [], []>} : vector<80x128xbf16>, vector<128x128xbf16>, vector<80x128xf32> -> vector<80x128xf32>
    %33 = arith.addf %28, %32 : vector<80x128xf32>
    %c10 = arith.constant 10 : index
    %c0_35 = arith.constant 0 : index
    %34 = vector.load %arg10[%c10, %c0_35] : memref<112x128xbf16, #tpu.memory_space<vmem>>, vector<80x128xbf16>
    %c1_36 = arith.constant 1 : index
    %c0_37 = arith.constant 0 : index
    %c0_38 = arith.constant 0 : index
    %c0_39 = arith.constant 0 : index
    %35 = vector.load %arg5[%c1_36, %c0_37, %c0_38, %c0_39] : memref<3x3x128x128xbf16, #tpu.memory_space<vmem>>, vector<1x1x128x128xbf16>
    %36 = vector.shape_cast %35 : vector<1x1x128x128xbf16> to vector<128x128xbf16>
    %cst_40 = arith.constant dense<0.000000e+00> : vector<80x128xf32>
    %37 = tpu.matmul %34, %36, %cst_40 {dimension_numbers = #tpu.dot_dimension_numbers<[1], [0], [0], [1], [0, 0, 1, 1], [], []>} : vector<80x128xbf16>, vector<128x128xbf16>, vector<80x128xf32> -> vector<80x128xf32>
    %38 = arith.addf %33, %37 : vector<80x128xf32>
    %c11_41 = arith.constant 11 : index
    %c0_42 = arith.constant 0 : index
    %39 = vector.load %arg10[%c11_41, %c0_42] : memref<112x128xbf16, #tpu.memory_space<vmem>>, vector<80x128xbf16>
    %c1_43 = arith.constant 1 : index
    %c1_44 = arith.constant 1 : index
    %c0_45 = arith.constant 0 : index
    %c0_46 = arith.constant 0 : index
    %40 = vector.load %arg5[%c1_43, %c1_44, %c0_45, %c0_46] : memref<3x3x128x128xbf16, #tpu.memory_space<vmem>>, vector<1x1x128x128xbf16>
    %41 = vector.shape_cast %40 : vector<1x1x128x128xbf16> to vector<128x128xbf16>
    %cst_47 = arith.constant dense<0.000000e+00> : vector<80x128xf32>
    %42 = tpu.matmul %39, %41, %cst_47 {dimension_numbers = #tpu.dot_dimension_numbers<[1], [0], [0], [1], [0, 0, 1, 1], [], []>} : vector<80x128xbf16>, vector<128x128xbf16>, vector<80x128xf32> -> vector<80x128xf32>
    %43 = arith.addf %38, %42 : vector<80x128xf32>
    %c12 = arith.constant 12 : index
    %c0_48 = arith.constant 0 : index
    %44 = vector.load %arg10[%c12, %c0_48] : memref<112x128xbf16, #tpu.memory_space<vmem>>, vector<80x128xbf16>
    %c1_49 = arith.constant 1 : index
    %c2_50 = arith.constant 2 : index
    %c0_51 = arith.constant 0 : index
    %c0_52 = arith.constant 0 : index
    %45 = vector.load %arg5[%c1_49, %c2_50, %c0_51, %c0_52] : memref<3x3x128x128xbf16, #tpu.memory_space<vmem>>, vector<1x1x128x128xbf16>
    %46 = vector.shape_cast %45 : vector<1x1x128x128xbf16> to vector<128x128xbf16>
    %cst_53 = arith.constant dense<0.000000e+00> : vector<80x128xf32>
    %47 = tpu.matmul %44, %46, %cst_53 {dimension_numbers = #tpu.dot_dimension_numbers<[1], [0], [0], [1], [0, 0, 1, 1], [], []>} : vector<80x128xbf16>, vector<128x128xbf16>, vector<80x128xf32> -> vector<80x128xf32>
    %48 = arith.addf %43, %47 : vector<80x128xf32>
    %c20 = arith.constant 20 : index
    %c0_54 = arith.constant 0 : index
    %49 = vector.load %arg10[%c20, %c0_54] : memref<112x128xbf16, #tpu.memory_space<vmem>>, vector<80x128xbf16>
    %c2_55 = arith.constant 2 : index
    %c0_56 = arith.constant 0 : index
    %c0_57 = arith.constant 0 : index
    %c0_58 = arith.constant 0 : index
    %50 = vector.load %arg5[%c2_55, %c0_56, %c0_57, %c0_58] : memref<3x3x128x128xbf16, #tpu.memory_space<vmem>>, vector<1x1x128x128xbf16>
    %51 = vector.shape_cast %50 : vector<1x1x128x128xbf16> to vector<128x128xbf16>
    %cst_59 = arith.constant dense<0.000000e+00> : vector<80x128xf32>
    %52 = tpu.matmul %49, %51, %cst_59 {dimension_numbers = #tpu.dot_dimension_numbers<[1], [0], [0], [1], [0, 0, 1, 1], [], []>} : vector<80x128xbf16>, vector<128x128xbf16>, vector<80x128xf32> -> vector<80x128xf32>
    %53 = arith.addf %48, %52 : vector<80x128xf32>
    %c21 = arith.constant 21 : index
    %c0_60 = arith.constant 0 : index
    %54 = vector.load %arg10[%c21, %c0_60] : memref<112x128xbf16, #tpu.memory_space<vmem>>, vector<80x128xbf16>
    %c2_61 = arith.constant 2 : index
    %c1_62 = arith.constant 1 : index
    %c0_63 = arith.constant 0 : index
    %c0_64 = arith.constant 0 : index
    %55 = vector.load %arg5[%c2_61, %c1_62, %c0_63, %c0_64] : memref<3x3x128x128xbf16, #tpu.memory_space<vmem>>, vector<1x1x128x128xbf16>
    %56 = vector.shape_cast %55 : vector<1x1x128x128xbf16> to vector<128x128xbf16>
    %cst_65 = arith.constant dense<0.000000e+00> : vector<80x128xf32>
    %57 = tpu.matmul %54, %56, %cst_65 {dimension_numbers = #tpu.dot_dimension_numbers<[1], [0], [0], [1], [0, 0, 1, 1], [], []>} : vector<80x128xbf16>, vector<128x128xbf16>, vector<80x128xf32> -> vector<80x128xf32>
    %58 = arith.addf %53, %57 : vector<80x128xf32>
    %c22 = arith.constant 22 : index
    %c0_66 = arith.constant 0 : index
    %59 = vector.load %arg10[%c22, %c0_66] : memref<112x128xbf16, #tpu.memory_space<vmem>>, vector<80x128xbf16>
    %c2_67 = arith.constant 2 : index
    %c2_68 = arith.constant 2 : index
    %c0_69 = arith.constant 0 : index
    %c0_70 = arith.constant 0 : index
    %60 = vector.load %arg5[%c2_67, %c2_68, %c0_69, %c0_70] : memref<3x3x128x128xbf16, #tpu.memory_space<vmem>>, vector<1x1x128x128xbf16>
    %61 = vector.shape_cast %60 : vector<1x1x128x128xbf16> to vector<128x128xbf16>
    %cst_71 = arith.constant dense<0.000000e+00> : vector<80x128xf32>
    %62 = tpu.matmul %59, %61, %cst_71 {dimension_numbers = #tpu.dot_dimension_numbers<[1], [0], [0], [1], [0, 0, 1, 1], [], []>} : vector<80x128xbf16>, vector<128x128xbf16>, vector<80x128xf32> -> vector<80x128xf32>
    %63 = arith.addf %58, %62 : vector<80x128xf32>
    %c0_72 = arith.constant 0 : index
    %c0_73 = arith.constant 0 : index
    %64 = vector.load %arg6[%c0_72, %c0_73] : memref<1x128xf32, #tpu.memory_space<vmem>>, vector<1x128xf32>
    %65 = vector.broadcast %64 : vector<1x128xf32> to vector<80x128xf32>
    %66 = arith.addf %63, %65 : vector<80x128xf32>
    %cst_74 = arith.constant 0.000000e+00 : f32
    %67 = vector.broadcast %cst_74 : f32 to vector<80x128xf32>
    %68 = arith.maximumf %66, %67 : vector<80x128xf32>
    %69 = arith.truncf %68 : vector<80x128xf32> to vector<80x128xbf16>
    %c0_75 = arith.constant 0 : index
    %c0_76 = arith.constant 0 : index
    %70 = vector.load %arg7[%c0_75, %c0_76] : memref<128x128xbf16, #tpu.memory_space<vmem>>, vector<128x128xbf16>
    %cst_77 = arith.constant dense<0.000000e+00> : vector<80x128xf32>
    %71 = tpu.matmul %69, %70, %cst_77 {dimension_numbers = #tpu.dot_dimension_numbers<[1], [0], [0], [1], [0, 0, 1, 1], [], []>} : vector<80x128xbf16>, vector<128x128xbf16>, vector<80x128xf32> -> vector<80x128xf32>
    %c0_78 = arith.constant 0 : index
    %c0_79 = arith.constant 0 : index
    %72 = vector.load %arg8[%c0_78, %c0_79] : memref<1x128xf32, #tpu.memory_space<vmem>>, vector<1x128xf32>
    %73 = vector.broadcast %72 : vector<1x128xf32> to vector<80x128xf32>
    %74 = arith.addf %71, %73 : vector<80x128xf32>
    %75 = arith.extf %5 : vector<80x128xbf16> to vector<80x128xf32>
    %76 = arith.addf %74, %75 : vector<80x128xf32>
    %cst_80 = arith.constant 0.000000e+00 : f32
    %77 = vector.broadcast %cst_80 : f32 to vector<80x128xf32>
    %78 = arith.maximumf %76, %77 : vector<80x128xf32>
    %c0_81 = arith.constant 0 : index
    %c0_82 = arith.constant 0 : index
    %c0_83 = arith.constant 0 : index
    %79 = vector.load %arg9[%c0_81, %c0_82, %c0_83] : memref<1x80x128xf32, #tpu.memory_space<vmem>>, vector<1x80x128xf32>
    %80 = vector.shape_cast %79 : vector<1x80x128xf32> to vector<80x128xf32>
    %81 = vector.shape_cast %78 : vector<80x128xf32> to vector<1x80x128xf32>
    tpu.vector_store %arg9[%c0_81, %c0_82, %c0_83], %81 {strides = array<i32>} : memref<1x80x128xf32, #tpu.memory_space<vmem>>, vector<1x80x128xf32>,
    return
  }
  func.func @transform_0(%arg0: i32) -> (i32, i32, i32) {
    %c0_i32 = arith.constant 0 : i32
    %c0_i32_0 = arith.constant 0 : i32
    %c0_i32_1 = arith.constant 0 : i32
    return %arg0, %c0_i32, %c0_i32_0 : i32, i32, i32
  }
  func.func @transform_1(%arg0: i32) -> (i32, i32) {
    %c0_i32 = arith.constant 0 : i32
    %c0_i32_0 = arith.constant 0 : i32
    %c0_i32_1 = arith.constant 0 : i32
    return %c0_i32, %c0_i32_0 : i32, i32
  }
  func.func @transform_2(%arg0: i32) -> (i32, i32) {
    %c0_i32 = arith.constant 0 : i32
    %c0_i32_0 = arith.constant 0 : i32
    %c0_i32_1 = arith.constant 0 : i32
    return %c0_i32, %c0_i32_0 : i32, i32
  }
  func.func @transform_3(%arg0: i32) -> (i32, i32) {
    %c0_i32 = arith.constant 0 : i32
    %c0_i32_0 = arith.constant 0 : i32
    %c0_i32_1 = arith.constant 0 : i32
    return %c0_i32, %c0_i32_0 : i32, i32
  }
  func.func @transform_4(%arg0: i32) -> (i32, i32, i32, i32) {
    %c0_i32 = arith.constant 0 : i32
    %c0_i32_0 = arith.constant 0 : i32
    %c0_i32_1 = arith.constant 0 : i32
    %c0_i32_2 = arith.constant 0 : i32
    %c0_i32_3 = arith.constant 0 : i32
    return %c0_i32, %c0_i32_0, %c0_i32_1, %c0_i32_2 : i32, i32, i32, i32
  }
  func.func @transform_5(%arg0: i32) -> (i32, i32) {
    %c0_i32 = arith.constant 0 : i32
    %c0_i32_0 = arith.constant 0 : i32
    %c0_i32_1 = arith.constant 0 : i32
    return %c0_i32, %c0_i32_0 : i32, i32
  }
  func.func @transform_6(%arg0: i32) -> (i32, i32) {
    %c0_i32 = arith.constant 0 : i32
    %c0_i32_0 = arith.constant 0 : i32
    %c0_i32_1 = arith.constant 0 : i32
    return %c0_i32, %c0_i32_0 : i32, i32
  }
  func.func @transform_7(%arg0: i32) -> (i32, i32) {
    %c0_i32 = arith.constant 0 : i32
    %c0_i32_0 = arith.constant 0 : i32
    %c0_i32_1 = arith.constant 0 : i32
    return %c0_i32, %c0_i32_0 : i32, i32
  }
  func.func @transform_8(%arg0: i32) -> (i32, i32, i32) {
    %c0_i32 = arith.constant 0 : i32
    %c0_i32_0 = arith.constant 0 : i32
    %c0_i32_1 = arith.constant 0 : i32
    return %arg0, %c0_i32, %c0_i32_0 : i32, i32, i32
  }
}

</mosaic_0001>

<bundles_post_ra>
// kernel: tpu_custom_call.1
= control target key start
LH: loop header
LB: loop body
LE: loop exit
PB: predicated region body
PF: predicated region fallthrough
CT: control target
= control target key end

     0   :  { %13 = vsyncpa [#allocation4], 0  ;;  %s4660_s0 = inlined_call_operand.vmem [shape: bf16[2,80,128], index: 0, kind: input, shape index: {}]   ;;  %s4661_s1 = inlined_call_operand.vmem [shape: f32[80,1], index: 1, kind: input, shape index: {}]   ;;  %s4662_s2 = inlined_call_operand.hbm [shape: bf16[128,128], index: 2, kind: input, shape index: {}]   ;;  %s4663_s3 = inlined_call_operand.vmem [shape: f32[1,128], index: 3, kind: input, shape index: {}]   ;;  %s4664_s4 = inlined_call_operand.hbm [shape: bf16[3,3,128,128], index: 4, kind: input, shape index: {}]   ;;  %s4665_s5 = inlined_call_operand.vmem [shape: f32[1,128], index: 5, kind: input, shape index: {}]   ;;  %s4666_s6 = inlined_call_operand.hbm [shape: bf16[128,128], index: 6, kind: input, shape index: {}]   ;;  %s4667_s7 = inlined_call_operand.vmem [shape: f32[1,128], index: 7, kind: input, shape index: {}]   ;;  %s4668_s8 = inlined_call_operand.hbm [shape: f32[2,80,128], index: 8, kind: output, shape index: {}]  }
   0x1   :  { %14 = vsyncpa [#allocation7], 0 }
   0x2   :  { %15 = vsyncpa [#allocation5], 0 }
   0x3   :  { %17 = vsyncpa [#allocation5 + $0x1], 0  ;;  %s3932_s27 = smov 0   ;;  %s3934_s28 = smov 0  }
   0x4   :  { %s3936_s29 = smov 0   ;;  %s3938_s30 = smov 0  }
   0x5 LB: > { %s3953_s9 = sadd.s32 4294967295, %s3874_s30   ;;  %s2812_s10 = sadd.s32 4294967294, %s3874_s30   ;;  %s3874_s30 = sphi %s3938_s30, %s4690_s30   ;;  %s3870_s29 = sphi %s3936_s29, %s4689_s29   ;;  %s3866_s28 = sphi %s3934_s28, %s4688_s28   ;;  %s3862_s27 = sphi %s3932_s27, %s4687_s27  }
   0x6   : > { %s3957_s11 = sadd.s32 1, %s3874_s30   ;;  %s203_s12 = sadd.s32 1, %s3870_s29 }
   0x7   : > { %s200_s13 = ssub.s32 %s3874_s30, %s3957_s11  ;;  %p213_p0 = scmp.ne.s32.totalorder %s3870_s29, %s3866_s28 }
   0x8   : > { %p201_p1 = scmp.eq.s32.totalorder %s200_s13, 0  ;;  %p214_p2 = scmp.eq.s32.totalorder %s3953_s9, 1 }
   0x9   : > { %p219_p3 = scmp.ne.s32.totalorder %s3866_s28, %s3862_s27  ;;  %p220_p4 = scmp.eq.s32.totalorder %s2812_s10, 1 }
   0xa   : > { %s3968_s14 = scalar_select %p201_p1, %s3870_s29, %s203_s12  }
   0xb   : > { %p3970_p5 = por %p214_p2, %p213_p0  ;;  %p3974_p6 = por %p220_p4, %p219_p3 }
   0xc   : > { %p2813_p7 = scmp.ge.s32.totalorder %s3874_s30, 1  ;;  %p227_p8 = scmp.lt.s32.totalorder %s3874_s30, 3 }
   0xd   : > { %s4671_s15 = scalar_select %p3970_p5, 1, 0 }
   0xe   : > { %s4672_s16 = scalar_select %p3974_p6, 1, 0 }
   0xf   : > { %p4669_p9 = scmp.eq.s32.totalorder %s3953_s9, 0  ;;  %p3981_p10 = pnand %p2813_p7, %p227_p8 }
  0x10   : > { %s3876_s18 = smov [#allocation6]   ;;  %s3877_s21 = smov [#allocation3]  }
  0x11   : > { %p3537_p11 = pneg %p3981_p10  ;;  %s258_s19 = sshll.u32 %s3876_s18, 4  ;;  %s259_s19 = int_to_ptr.vmem [resolvable:$true] %s258_s19 }
  0x12   : > { %s242_s22 = sshll.u32 %s3877_s21, 4  ;;  %s3878_s23 = smov [#allocation8]   ;;  %s243_s22 = int_to_ptr.vmem [resolvable:$true] %s242_s22 }
  0x13   : > { %p3989_p12 = pnand %p4669_p9, %p3537_p11  ;;  %s274_s24 = sshll.u32 %s3878_s23, 4  ;;  %s275_s24 = int_to_ptr.vmem [resolvable:$true] %s274_s24 }
  0x14   : > { %s3739_s25 = scalar_lea.vmem %s259_s19, 9216  ;;  %p3747_p3 = scmp.lt.s32.totalorder %s259_s19, %s259_s19 }
  0x15   : > { %p3730_p13 = pneg %p3989_p12  ;;  %p3740_p0 = scmp.ne.s32.totalorder %s259_s19, %s3739_s25 }
  0x16   : > { %p3748_p4 = scmp.lt.s32.totalorder %s3739_s25, %s3739_s25 }
  0x17   : > { %p3742_p1 = pnand %p3740_p0, %p3730_p13 }
  0x18   : > { %p3749_p7 = por %p3748_p4, %p3747_p3 }
  0x19   : > { %p3743_p2 = pneg %p3742_p1 }
  0x1b   : > { %p3750_p8 = pnand %p3749_p7, %p3743_p2 }
  0x1d   : > { %3753 = shalt.err (!%p3750_p8)
}
  0x1e   : > { %s3879_s26 = smov 64   ;;  %s3880_s10 = smov 4  }
  0x1f   : > { %3543 = dma.hbm_to_vmem [thread:$0]  (!%p3989_p12), %s4664_s4, 9216, %s259_s19, [#allocation7], %s3879_s26, %s3879_s26, %s3880_s10  }
  0x20   : > { %s3765_s18 = scalar_lea.vmem %s243_s22, 1024  ;;  %p3773_p9 = scmp.lt.s32.totalorder %s243_s22, %s243_s22 }
  0x21   : > { %p3766_p11 = scmp.ne.s32.totalorder %s243_s22, %s3765_s18  ;;  %p3774_p6 = scmp.lt.s32.totalorder %s3765_s18, %s3765_s18 }
  0x23   : > { %p3768_p0 = pnand %p3766_p11, %p3730_p13  ;;  %p3775_p3 = por %p3774_p6, %p3773_p9 }
  0x25   : > { %p3769_p1 = pneg %p3768_p0 }
  0x27   : > { %p3776_p2 = pnand %p3775_p3, %p3769_p1 }
  0x29   : > { %3779 = shalt.err (!%p3776_p2)
}
  0x2a   : > { %3540 = dma.hbm_to_vmem [thread:$0]  (!%p3989_p12), %s4662_s2, 1024, %s243_s22, [#allocation4], %s3879_s26, %s3879_s26, %s3880_s10  }
  0x2b   : > { %s3791_s19 = scalar_lea.vmem %s275_s24, 1024  ;;  %p3799_p11 = scmp.lt.s32.totalorder %s275_s24, %s275_s24 }
  0x2c   : > { %p3792_p4 = scmp.ne.s32.totalorder %s275_s24, %s3791_s19  ;;  %p3800_p0 = scmp.lt.s32.totalorder %s3791_s19, %s3791_s19 }
  0x2e   : > { %p3794_p7 = pnand %p3792_p4, %p3730_p13  ;;  %p3801_p5 = por %p3800_p0, %p3799_p11 }
  0x30   : > { %p3795_p8 = pneg %p3794_p7 }
  0x32   : > { %p3802_p6 = pnand %p3801_p5, %p3795_p8 }
  0x34   : > { %3805 = shalt.err (!%p3802_p6)
}
  0x35   : > { %3546 = dma.hbm_to_vmem [thread:$0]  (!%p3989_p12), %s4666_s6, 1024, %s275_s24, [#allocation7], %s3879_s26, %s3879_s26, %s3880_s10  }
  0x36   : > { %301 = sbr.rel (%p3981_p10) target bundleno = 941 (0x3ad), region = 52  ;;  %p4675_p9 = scmp.eq.s32.totalorder (!%p3981_p10), %s3953_s9, 0 }
  0x3b   : > { %3849 = dma.done.wait (%p4675_p9), [#allocation4], 1024   ;;  %p4676_p13 = pmov %p4675_p9 }
  0x3c   : > { %p4677_p1 = pmov %p4675_p9 }
  0x3d   : > { %3851 = vsyncadd (%p4676_p13), [#allocation4], 4294966272 }
  0x3e   : > { %3853 = dma.done.wait (%p4677_p1), [#allocation7], 10240   ;;  %p4678_p5 = pmov %p4677_p1 }
  0x3f   : > { %v3881_v0 = vmov 0.0   ;;  %vm3882_vm0 = vmmov 0   ;;  %v3883_v1 = vmov 0   ;;  %v3602_v2 = vld [vmem:[#allocation3 + $0x38] sm:$0xff]   ;;  %v3603_v3 = vld [vmem:[#allocation3 + $0x30] sm:$0xff]   ;;  %v3604_v4 = vld [vmem:[#allocation3 + $0x28] sm:$0xff]  }
  0x40   : > { %3855 = vsyncadd (%p4678_p5), [#allocation7], 4294957056  ;;  %3108 = vmatprep.subr.bf16.mxu0 %v3881_v0  ;;  %3124 = vmatprep.mubr.msk.bf16.mxu0 %vm3882_vm0, %v3881_v0  ;;  %349 = vst [vmem:[#allocation2] sm:$0xf] %v3883_v1  ;;  %p343_p10 = scmp.lt.s32.totalorder %s3953_s9, 1  ;;  %v558_v5 = vld [vmem:[%s4661_s1] sm:$0xff] }
  0x41   : > { %362 = vst [vmem:[#allocation2 + $0x30] sm:$0xf] %v3883_v1  ;;  %3600 = vset.pattern.permute.xlu0 %v3883_v1  ;;  %3601 = vset.pattern.permute.xlu1 %v3883_v1  ;;  %v3605_v6 = vld [vmem:[#allocation3 + $0x20] sm:$0xff]   ;;  %v560_v7 = vld [vmem:[%s4661_s1 + $0x10] sm:$0xff]  ;;  %v559_v8 = vld [vmem:[%s4661_s1 + $0x8] sm:$0xff]  ;;  %vm350_vm1 = vcmask 1041408  }
  0x42   : > { %3144 = vmatprep.subr.bf16.mxu1 %v3881_v0  ;;  %3160 = vmatprep.mubr.msk.bf16.mxu1 %vm3882_vm0, %v3881_v0  ;;  %s4049_s13 = scalar_select %p343_p10, %s3953_s9, 1  ;;  %v561_v9 = vld [vmem:[%s4661_s1 + $0x18] sm:$0xff]  ;;  %v3606_v10 = vld [vmem:[#allocation3 + $0x18] sm:$0xff]   ;;  %v562_v11 = vld [vmem:[%s4661_s1 + $0x20] sm:$0xff]  ;;  %vm356_vm2 = vcmask 1043457   ;;  %vm1175_vm10 = vcmask 1046528  }
  0x43   : > { %3109 = vmatpush3.bf16.msra.mxu0 %v3602_v2  ;;  %570 = vperm.xlu0 %3600, %v558_v5   ;;  %vm351_vm3 = vsmask.f32 1280  ;;  %v353_v12 = vld [vmem:[#allocation2 + $0x4] sm:$0x3]  ;;  %vm357_vm4 = vsmask.f32 7942 }
  0x44   : > { %3110 = vmatprep.subr.bf16.mxu0 %v3881_v0  ;;  %580 = vperm.xlu1 %3601, %v560_v7   ;;  %v3607_v13 = vld [vmem:[#allocation3 + $0x10] sm:$0xff]   ;;  %vm4062_vm5 = vmand %vm350_vm1, %vm351_vm3  ;;  %s3521_s17 = smul.u32 40, %s4049_s13  ;;  %v564_v17 = vld [vmem:[%s4661_s1 + $0x30] sm:$0xff]  ;;  %vm658_vm7 = vsmask.f32 5392  ;;  %vm1758_vm11 = vcmask 1045504  }
  0x45   : > { %v563_v14 = vld [vmem:[%s4661_s1 + $0x28] sm:$0xff]  ;;  %v354_v18 = vsel %vm4062_vm5, 0, %v353_v12  ;;  %vm4072_vm6 = vmand %vm356_vm2, %vm357_vm4  ;;  %v565_v20 = vld [vmem:[%s4661_s1 + $0x38] sm:$0xff]  ;;  %vm857_vm9 = vsmask.f32 7424  ;;  %vm2341_vm14 = vcmask 1044480  }
  0x46   : > { %v359_v16 = vld [vmem:[#allocation2 + $0x2c] sm:$0xe]  ;;  %355 = vst [vmem:[#allocation2 + $0x4] sm:$0x3] %v354_v18  ;;  %v3608_v22 = vld [vmem:[#allocation3 + $0x8] sm:$0xff]   ;;  %s4085_s18 = scalar_lea.vmem %s4660_s0, %s3521_s17  ;;  %v3609_v25 = vld [vmem:[#allocation3] sm:$0xff]  }
  0x47   : > { %3111 = vmatpush3.bf16.msra.mxu0 %v3603_v3  ;;  %575 = vperm.xlu0 %3600, %v559_v8   ;;  %v360_v21 = vsel %vm4072_vm6, 0, %v359_v16  ;;  %v566_v23 = vld [vmem:[%s4661_s1 + $0x40] sm:$0xff]  ;;  %v567_v24 = vld [vmem:[%s4661_s1 + $0x48] sm:$0xff]  ;;  %v3615_v27 = vld [vmem:[#allocation6 + $0x38] sm:$0xff]   ;;  %vm1547_vm12 = vsmask.f32 6400 }
  0x48   : > { %3112 = vmatprep.subr.bf16.mxu0 %v3881_v0  ;;  %585 = vperm.xlu1 %3601, %v561_v9   ;;  %361 = vst [vmem:[#allocation2 + $0x2c] sm:$0xe] %v360_v21  ;;  %v364_v26 = vld [vmem:[%s4085_s18] sm:$0xff]   ;;  %v366_v28 = vld [vmem:[%s4085_s18 + $0x8] sm:$0xff]   ;;  %v368_v30 = vld [vmem:[%s4085_s18 + $0x10] sm:$0xff]   ;;  %s340_s24 = sand.u32 1, %s3866_s28  }
  0x49   : > { %v3616_v29 = vld [vmem:[#allocation6 + $0x30] sm:$0xff]   ;;  %v370_v31 = vld [vmem:[%s4085_s18 + $0x18] sm:$0xff]   ;;  %v372_v32 = vld [vmem:[%s4085_s18 + $0x20] sm:$0xff]   ;;  %vm2130_vm13 = vsmask.f32 5376  ;;  %s3520_s13 = smul.u32 80, %s340_s24 }
  0x4a   : > { %v3617_v33 = vld [vmem:[#allocation6 + $0x28] sm:$0xff]   ;;  %v3618_v34 = vld [vmem:[#allocation6 + $0x78] sm:$0xff]   ;;  %v3619_v35 = vld [vmem:[#allocation6 + $0x20] sm:$0xff]   ;;  %s3522_s23 = smul.u32 1280, %s3953_s9  ;;  %s4620_s17 = scalar_lea.sflag [#allocation5], %s340_s24 }
  0x4b   : > { %3113 = vmatpush3.bf16.msra.mxu0 %v3604_v4  ;;  %590 = vperm.xlu0 %3600, %v562_v11   ;;  %v3620_v36 = vld [vmem:[#allocation6 + $0x70] sm:$0xff]   ;;  %v3621_v37 = vld [vmem:[#allocation6 + $0x18] sm:$0xff]   ;;  %v3622_v38 = vld [vmem:[#allocation6 + $0x68] sm:$0xff]   ;;  %s4585_s21 = scalar_lea.vmem [#allocation9], %s3520_s13  ;;  %p4685_p3 = scmp.ne.s32.totalorder %s4671_s15, 0 }
  0x4c   : > { %3114 = vmatprep.subr.bf16.mxu0 %v3881_v0  ;;  %595 = vperm.xlu1 %3601, %v563_v14   ;;  %v3623_v39 = vld [vmem:[#allocation6 + $0x10] sm:$0xff]   ;;  %v3624_v40 = vld [vmem:[#allocation6 + $0x60] sm:$0xff]   ;;  %v3625_v41 = vld [vmem:[#allocation6 + $0x8] sm:$0xff]   ;;  %s2719_s19 = sshll.u32 %s4585_s21, 4  ;;  %s4615_s12 = scalar_lea.hbm %s4668_s8, %s3522_s23  ;;  %s4610_s19 = int_to_ptr.vmem [resolvable:$true] %s2719_s19 }
  0x4d   : > { %3145 = vmatpush3.bf16.msra.mxu1 %v3618_v34  ;;  %v3626_v42 = vld [vmem:[#allocation6 + $0x58] sm:$0xff]   ;;  %v3627_v43 = vld [vmem:[#allocation6] sm:$0xff]   ;;  %v3629_v44 = vld [vmem:[#allocation6 + $0x50] sm:$0xff]   ;;  %s3806_s9 = scalar_lea.vmem %s4610_s19, 1280  ;;  %s3884_s20 = smov [#allocation9]  }
  0x4e   : > { %3146 = vmatprep.subr.bf16.mxu1 %v3881_v0  ;;  %v3630_v45 = vld [vmem:[#allocation6 + $0x48] sm:$0xff]   ;;  %v3632_v46 = vld [vmem:[#allocation6 + $0x40] sm:$0xff]   ;;  %vm4139_vm8 = vmor %vm351_vm3, %vm658_vm7  ;;  %p3807_p12 = scmp.ne.s32.totalorder %s4610_s19, %s3806_s9  ;;  %s3810_s22 = sshll.u32 %s3884_s20, 4  ;;  %s3811_s22 = int_to_ptr.vmem [resolvable:$false] %s3810_s22 }
  0x4f   : > { %3115 = vmatpush3.bf16.msra.mxu0 %v3605_v6  ;;  %600 = vperm.xlu0 %3600, %v564_v17   ;;  %v4130_v47 = vld [vmem:[%s4663_s3] ss:$0 sm:$0xff]  ;;  %v770_v8 = vld [vmem:[#allocation2 + $0x4] sm:$0xe]  ;;  %v3649_v15 = vld [vmem:[#allocation6 + $0x90] sm:$0xff]   ;;  %s3812_s26 = scalar_lea.vmem %s3811_s22, 2560  ;;  %p3813_p7 = scmp.lt.s32.totalorder %s4610_s19, %s3811_s22 }
  0x50   : > { %3116 = vmatprep.subr.bf16.mxu0 %v3881_v0  ;;  %605 = vperm.xlu1 %3601, %v565_v20   ;;  %p3808_p2 = pnand %p3807_p12, %p4685_p3  ;;  %p3814_p8 = scmp.lt.s32.totalorder %s3812_s26, %s3806_s9 }
  0x51   : > { %3147 = vmatpush3.bf16.msra.mxu1 %v3620_v36 }
  0x52   : > { %3148 = vmatprep.subr.bf16.mxu1 %v3881_v0  ;;  %p3809_p4 = pneg %p3808_p2  ;;  %p3815_p11 = por %p3814_p8, %p3813_p7 }
  0x53   : > { %3117 = vmatpush3.bf16.msra.mxu0 %v3606_v10  ;;  %610 = vperm.xlu0 %3600, %v566_v23  }
  0x54   : > { %3118 = vmatprep.subr.bf16.mxu0 %v3881_v0  ;;  %615 = vperm.xlu1 %3601, %v567_v24   ;;  %p3816_p0 = pnand %p3815_p11, %p3809_p4 }
  0x55   : > { %3149 = vmatpush3.bf16.msra.mxu1 %v3622_v38 }
  0x56   : > { %3150 = vmatprep.subr.bf16.mxu1 %v3881_v0 }
  0x57   : > { %3119 = vmatpush3.bf16.msra.mxu0 %v3607_v13 }
  0x58   : > { %3120 = vmatprep.subr.bf16.mxu0 %v3881_v0 }
  0x59   : > { %3151 = vmatpush3.bf16.msra.mxu1 %v3624_v40 }
  0x5a   : > { %3152 = vmatprep.subr.bf16.mxu1 %v3881_v0 }
  0x5b   : > { %3121 = vmatpush3.bf16.msra.mxu0 %v3608_v22 }
  0x5c   : > { %3122 = vmatprep.subr.bf16.mxu0 %v3881_v0 }
  0x5d   : > { %3153 = vmatpush3.bf16.msra.mxu1 %v3626_v42 }
  0x5e   : > { %3154 = vmatprep.subr.bf16.mxu1 %v3881_v0 }
  0x5f   : > { %3123 = vmatpush3.bf16.msra.mxu0 %v3609_v25 }
  0x60   : > { %3180 = vmatprep.subr.bf16.mxu0 %v3881_v0 }
  0x61   : > { %3155 = vmatpush3.bf16.msra.mxu1 %v3629_v44 }
  0x62   : > { %3125 = vmatmul.mubr.bf16.vlgmr.msra.gmra.mxu0 %v364_v26  ;;  %3156 = vmatprep.subr.bf16.mxu1 %v3881_v0 }
  0x63   : > { %3128 = vmatprep.mubr.msk.bf16.mxu0 %vm3882_vm0, %v3881_v0  ;;  %3181 = vmatpush3.bf16.msra.mxu0 %v3615_v27 }
  0x64   : > { %3182 = vmatprep.subr.bf16.mxu0 %v3881_v0 }
  0x65   : > { %3157 = vmatpush3.bf16.msra.mxu1 %v3630_v45 }
  0x66   : > { %3158 = vmatprep.subr.bf16.mxu1 %v3881_v0 }
  0x67   : > { %3183 = vmatpush3.bf16.msra.mxu0 %v3616_v29 }
  0x68   : > { %3184 = vmatprep.subr.bf16.mxu0 %v3881_v0 }
  0x69   : > { %3159 = vmatpush3.bf16.msra.mxu1 %v3632_v46 }
  0x6a   : > { %3129 = vmatmul.mubr.bf16.gmra.mxu0 %v366_v28  ;;  %3216 = vmatprep.subr.bf16.mxu1 %v3881_v0 }
  0x6b   : > { %3132 = vmatprep.mubr.msk.bf16.mxu0 %vm3882_vm0, %v3881_v0  ;;  %3185 = vmatpush3.bf16.msra.mxu0 %v3617_v33 }
  0x6c   : > { %3186 = vmatprep.subr.bf16.mxu0 %v3881_v0 }
  0x6f   : > { %3187 = vmatpush3.bf16.msra.mxu0 %v3619_v35 }
  0x70   : > { %3188 = vmatprep.subr.bf16.mxu0 %v3881_v0 }
  0x72   : > { %3133 = vmatmul.mubr.bf16.gmra.mxu0 %v368_v30 }
  0x73   : > { %3136 = vmatprep.mubr.msk.bf16.mxu0 %vm3882_vm0, %v3881_v0  ;;  %3189 = vmatpush3.bf16.msra.mxu0 %v3621_v37 }
  0x74   : > { %3190 = vmatprep.subr.bf16.mxu0 %v3881_v0 }
  0x77   : > { %3191 = vmatpush3.bf16.msra.mxu0 %v3623_v39 }
  0x78   : > { %3192 = vmatprep.subr.bf16.mxu0 %v3881_v0 }
  0x7a   : > { %3137 = vmatmul.mubr.bf16.gmra.mxu0 %v370_v31 }
  0x7b   : > { %3140 = vmatprep.mubr.msk.bf16.mxu0 %vm3882_vm0, %v3881_v0  ;;  %3193 = vmatpush3.bf16.msra.mxu0 %v3625_v41 }
  0x7c   : > { %3194 = vmatprep.subr.bf16.mxu0 %v3881_v0 }
  0x7f   : > { %3195 = vmatpush3.bf16.msra.mxu0 %v3627_v43 }
  0x80   : > { %3252 = vmatprep.subr.bf16.mxu0 %v3881_v0 }
  0x82   : > { %3141 = vmatmul.mubr.bf16.gmra.mxu0 %v372_v32 }
  0x83   : > { %3196 = vmatprep.mubr.msk.bf16.mxu0 %vm3882_vm0, %v3881_v0 }
  0xbe   : > { %v571_v50 = vpop.permute.xlu0 %570 }
  0xbf   : > { %v581_v3 = vpop.permute.xlu1 %580 }
  0xc2   : > { %v576_v59 = vpop.permute.xlu0 %575 }
  0xc3   : > { %v586_v25 = vpop.permute.xlu1 %585 }
  0xc6   : > { %v591_v34 = vpop.permute.xlu0 %590 }
 0x122   : > { %v509_v48 = vpop.f32.mrf.mxu0 }
 0x123   : > { %v510_v49 = vadd.f32 %v4130_v47, %v509_v48 }
 0x124   : > { %v3126_v51 = vpop.f32.mrf.mxu0 }
 0x125   : > { %v548_v52 = vmax.f32 %v510_v49, 0.0  ;;  %v785_v49 = vld [vmem:[#allocation2] sm:$0xf]  ;;  %v596_v51 = vpop.permute.xlu1 %595 }
 0x126   : > { %v512_v53 = vpop.f32.mrf.mxu0 }
 0x127   : > { %v618_v54 = vmul.f32 %v571_v50, %v548_v52  ;;  %v513_v55 = vadd.f32 %v4130_v47, %v512_v53 }
 0x128   : > { %v3127_v56 = vpop.f32.mrf.mxu0 }
 0x129   : > { %v2955_v57 = vpack.c.bf16 %v618_v54, %v618_v54  ;;  %v549_v58 = vmax.f32 %v513_v55, 0.0 }
 0x12a   : > { %v517_v60 = vpop.f32.mrf.mxu0 }
 0x12b   : > { %v661_v61 = vshrl.u32 %v2955_v57, 16  ;;  %v664_v62 = vshll.u32 %v2955_v57, 16  ;;  %v619_v63 = vmul.f32 %v576_v59, %v549_v58  ;;  %v518_v1 = vadd.f32 %v4130_v47, %v517_v60  ;;  %v3633_v60 = vld [vmem:[#allocation6 + $0xf8] sm:$0xff]  }
 0x12c   : > { %v3130_v2 = vpop.f32.mrf.mxu0 }
 0x12d   : > { %v663_v4 = vrot.slane %v661_v61, 6  ;;  %v666_v5 = vrot.slane %v664_v62, 7  ;;  %v2956_v6 = vpack.c.bf16 %v619_v63, %v619_v63  ;;  %v550_v7 = vmax.f32 %v518_v1, 0.0 }
 0x12e   : > { %v520_v9 = vpop.f32.mrf.mxu0 }
 0x12f   : > { %v667_v10 = vor.u32 %v666_v5, %v663_v4  ;;  %v670_v11 = vshrl.u32 %v2956_v6, 16  ;;  %v673_v12 = vshll.u32 %v2956_v6, 16  ;;  %v620_v13 = vmul.f32 %v581_v3, %v550_v7  ;;  %v601_v6 = vpop.permute.xlu0 %600 }
 0x130   : > { %v521_v14 = vadd.f32 %v4130_v47, %v520_v9  ;;  %v3131_v16 = vpop.f32.mrf.mxu0 }
 0x131   : > { %v771_v17 = vsel %vm4072_vm6, %v667_v10, %v770_v8  ;;  %v672_v18 = vrot.slane %v670_v11, 6  ;;  %v675_v20 = vrot.slane %v673_v12, 7  ;;  %v2957_v22 = vpack.c.bf16 %v620_v13, %v620_v13  ;;  %v3635_v16 = vld [vmem:[#allocation6 + $0xf0] sm:$0xff]  }
 0x132   : > { %772 = vst [vmem:[#allocation2 + $0x4] sm:$0xe] %v771_v17  ;;  %v551_v23 = vmax.f32 %v521_v14, 0.0  ;;  %v525_v24 = vpop.f32.mrf.mxu0  ;;  %v668_v26 = vrot.slane %v667_v10, 4 }
 0x133   : > { %v676_v27 = vor.u32 %v675_v20, %v672_v18  ;;  %v526_v28 = vadd.f32 %v4130_v47, %v525_v24  ;;  %v680_v29 = vshrl.u32 %v2957_v22, 16  ;;  %v683_v30 = vshll.u32 %v2957_v22, 16 }
 0x134   : > { %v621_v19 = vmul.f32 %v586_v25, %v551_v23  ;;  %v3134_v31 = vpop.f32.mrf.mxu0 }
 0x135   : > { %v677_v32 = vsel %vm4139_vm8, %v668_v26, %v676_v27  ;;  %v552_v33 = vmax.f32 %v526_v28, 0.0  ;;  %v682_v35 = vrot.slane %v680_v29, 6  ;;  %v685_v36 = vrot.slane %v683_v30, 7  ;;  %v606_v29 = vpop.permute.xlu1 %605 }
 0x136   : > { %773 = vst [vmem:[#allocation2 + $0x8] sm:$0xf] %v677_v32  ;;  %v2958_v37 = vpack.c.bf16 %v621_v19, %v621_v19  ;;  %v528_v38 = vpop.f32.mrf.mxu0  ;;  %v678_v41 = vrot.slane %v676_v27, 4 }
 0x137   : > { %v622_v39 = vmul.f32 %v591_v34, %v552_v33  ;;  %v529_v40 = vadd.f32 %v4130_v47, %v528_v38  ;;  %v686_v42 = vor.u32 %v685_v36, %v682_v35  ;;  %v3637_v33 = vld [vmem:[#allocation6 + $0xe8] sm:$0xff]  }
 0x138   : > { %v690_v43 = vshrl.u32 %v2958_v37, 16  ;;  %v693_v44 = vshll.u32 %v2958_v37, 16  ;;  %v3135_v45 = vpop.f32.mrf.mxu0 }
 0x139   : > { %v2959_v46 = vpack.c.bf16 %v622_v39, %v622_v39  ;;  %v553_v48 = vmax.f32 %v529_v40, 0.0  ;;  %v4147_v50 = vld [vmem:[#allocation2 + $0x4] sm:$0xf]  ;;  %v687_v52 = vsel %vm4139_vm8, %v678_v41, %v686_v42  ;;  %v688_v61 = vrot.slane %v686_v42, 4  ;;  %v611_v42 = vpop.permute.xlu0 %610 }
 0x13a   : > { %v692_v53 = vrot.slane %v690_v43, 6  ;;  %v695_v54 = vrot.slane %v693_v44, 7  ;;  %v533_v55 = vpop.f32.mrf.mxu0  ;;  %774 = vst [vmem:[#allocation2 + $0xc] sm:$0xf] %v687_v52  ;;  %v2847_v1 = vcombine.low %v785_v49, %v4147_v50  ;;  %v3634_v49 = vld [vmem:[#allocation6 + $0xb8] sm:$0xff]  }
 0x13b   : > { %v700_v56 = vshrl.u32 %v2959_v46, 16  ;;  %v703_v57 = vshll.u32 %v2959_v46, 16  ;;  %v623_v58 = vmul.f32 %v596_v51, %v553_v48  ;;  %v534_v59 = vadd.f32 %v4130_v47, %v533_v55 }
 0x13c   : > { %v696_v62 = vor.u32 %v695_v54, %v692_v53  ;;  %v3138_v63 = vpop.f32.mrf.mxu0  ;;  %3197 = vmatmul.mubr.bf16.vlgmr.msra.gmra.mxu0 %v2847_v1  ;;  %v861_v10 = vshll.u32 %v2847_v1, 16  ;;  %v859_v32 = vshrl.u32 %v2847_v1, 16  ;;  %v3639_v54 = vld [vmem:[#allocation6 + $0xe0] sm:$0xff]  }
 0x13d   : > { %v702_v2 = vrot.slane %v700_v56, 6  ;;  %v705_v3 = vrot.slane %v703_v57, 7  ;;  %v2960_v4 = vpack.c.bf16 %v623_v58, %v623_v58  ;;  %v554_v5 = vmax.f32 %v534_v59, 0.0  ;;  %3200 = vmatprep.mubr.msk.bf16.mxu0 %vm3882_vm0, %v3881_v0  ;;  %3253 = vmatpush3.bf16.msra.mxu0 %v3633_v60  ;;  %v616_v63 = vpop.permute.xlu1 %615 }
 0x13e   : > { %v697_v7 = vsel %vm4139_vm8, %v688_v61, %v696_v62  ;;  %v698_v8 = vrot.slane %v696_v62, 4  ;;  %v536_v9 = vpop.f32.mrf.mxu0  ;;  %3254 = vmatprep.subr.bf16.mxu0 %v3881_v0  ;;  %v863_v24 = vrot.slane %v861_v10, 1 }
 0x13f   : > { %775 = vst [vmem:[#allocation2 + $0x10] sm:$0xf] %v697_v7  ;;  %v706_v11 = vor.u32 %v705_v3, %v702_v2  ;;  %v710_v12 = vshrl.u32 %v2960_v4, 16  ;;  %v713_v13 = vshll.u32 %v2960_v4, 16  ;;  %v624_v14 = vmul.f32 %v601_v6, %v554_v5  ;;  %v3638_v3 = vld [vmem:[#allocation6 + $0xb0] sm:$0xff]  }
 0x140   : > { %v537_v17 = vadd.f32 %v4130_v47, %v536_v9  ;;  %v3139_v18 = vpop.f32.mrf.mxu0  ;;  %v864_v41 = vor.u32 %v863_v24, %v859_v32 }
 0x141   : > { %v707_v20 = vsel %vm4139_vm8, %v698_v8, %v706_v11  ;;  %v712_v22 = vrot.slane %v710_v12, 6  ;;  %v715_v23 = vrot.slane %v713_v13, 7  ;;  %v2961_v25 = vpack.c.bf16 %v624_v14, %v624_v14  ;;  %v4161_v28 = vld [vmem:[#allocation2 + $0x8] sm:$0xff]   ;;  %3255 = vmatpush3.bf16.msra.mxu0 %v3635_v16  ;;  %v3642_v12 = vld [vmem:[#allocation6 + $0xd8] sm:$0xff]  }
 0x142   : > { %776 = vst [vmem:[#allocation2 + $0x14] sm:$0xf] %v707_v20  ;;  %v555_v26 = vmax.f32 %v537_v17, 0.0  ;;  %v541_v27 = vpop.f32.mrf.mxu0  ;;  %v708_v30 = vrot.slane %v706_v11, 4  ;;  %v866_v38 = vshll.u32 %v4161_v28, 16  ;;  %3256 = vmatprep.subr.bf16.mxu0 %v3881_v0  ;;  %v870_v4 = vshrl.u32 %v4161_v28, 16 }
 0x143   : > { %v716_v19 = vor.u32 %v715_v23, %v712_v22  ;;  %v542_v31 = vadd.f32 %v4130_v47, %v541_v27  ;;  %v720_v34 = vshrl.u32 %v2961_v25, 16  ;;  %v723_v35 = vshll.u32 %v2961_v25, 16  ;;  %v3640_v22 = vld [vmem:[#allocation6 + $0xa8] sm:$0xff]   ;;  %v3644_v27 = vld [vmem:[#allocation6 + $0xd0] sm:$0xff]  }
 0x144   : > { %v625_v36 = vmul.f32 %v606_v29, %v555_v26  ;;  %v3142_v37 = vpop.f32.mrf.mxu0  ;;  %3201 = vmatmul.mubr.bf16.gmra.mxu0 %v4161_v28  ;;  %v868_v48 = vrot.slane %v866_v38, 1  ;;  %v3647_v38 = vld [vmem:[#allocation6 + $0xc8] sm:$0xff]  }
 0x145   : > { %v717_v39 = vsel %vm4139_vm8, %v708_v30, %v716_v19  ;;  %v556_v40 = vmax.f32 %v542_v31, 0.0  ;;  %v722_v43 = vrot.slane %v720_v34, 6  ;;  %v725_v44 = vrot.slane %v723_v35, 7  ;;  %3204 = vmatprep.mubr.msk.bf16.mxu0 %vm3882_vm0, %v3881_v0  ;;  %3257 = vmatpush3.bf16.msra.mxu0 %v3637_v33  ;;  %v3643_v31 = vld [vmem:[#allocation6 + $0xa0] sm:$0xff]   ;;  %v782_v35 = vld [vmem:[#allocation2 + $0x2c] sm:$0x3] }
 0x146   : > { %777 = vst [vmem:[#allocation2 + $0x18] sm:$0xf] %v717_v39  ;;  %v2962_v45 = vpack.c.bf16 %v625_v36, %v625_v36  ;;  %v544_v46 = vpop.f32.mrf.mxu0  ;;  %v718_v51 = vrot.slane %v716_v19, 4  ;;  %v869_v59 = vsel %vm857_vm9, %v864_v41, %v868_v48  ;;  %3258 = vmatprep.subr.bf16.mxu0 %v3881_v0  ;;  %v872_v11 = vor.u32 %v870_v4, %v868_v48 }
 0x147   : > { %v626_v52 = vmul.f32 %v611_v42, %v556_v40  ;;  %v545_v53 = vadd.f32 %v4130_v47, %v544_v46  ;;  %v726_v55 = vor.u32 %v725_v44, %v722_v43  ;;  %3161 = vmatmul.mubr.bf16.vlgmr.msra.gmra.mxu1 %v869_v59  ;;  %v3646_v43 = vld [vmem:[#allocation6 + $0x98] sm:$0xff]  }
 0x148   : > { %v730_v56 = vshrl.u32 %v2962_v45, 16  ;;  %v733_v57 = vshll.u32 %v2962_v45, 16  ;;  %v3143_v58 = vpop.f32.mrf.mxu0  ;;  %3217 = vmatpush3.bf16.msra.mxu1 %v3634_v49  ;;  %3164 = vmatprep.mubr.msk.bf16.mxu1 %vm3882_vm0, %v3881_v0  ;;  %v3648_v45 = vld [vmem:[#allocation6 + $0xc0] sm:$0xff]  }
 0x149   : > { %v2963_v60 = vpack.c.bf16 %v626_v52, %v626_v52  ;;  %v557_v61 = vmax.f32 %v545_v53, 0.0  ;;  %v4174_v62 = vld [vmem:[#allocation2 + $0x10] sm:$0xff]   ;;  %v727_v47 = vsel %vm4139_vm8, %v718_v51, %v726_v55  ;;  %3218 = vmatprep.subr.bf16.mxu1 %v3881_v0  ;;  %3259 = vmatpush3.bf16.msra.mxu0 %v3639_v54  ;;  %v728_v9 = vrot.slane %v726_v55, 4  ;;  %v4219_v51 = vld [vmem:[#allocation2 + $0x8] sm:$0xf] }
 0x14a   : > { %v732_v1 = vrot.slane %v730_v56, 6  ;;  %v735_v2 = vrot.slane %v733_v57, 7  ;;  %778 = vst [vmem:[#allocation2 + $0x1c] sm:$0xf] %v727_v47  ;;  %v874_v8 = vshll.u32 %v4174_v62, 16  ;;  %3260 = vmatprep.subr.bf16.mxu0 %v3881_v0  ;;  %v878_v36 = vshrl.u32 %v4174_v62, 16 }
 0x14b   : > { %v740_v5 = vshrl.u32 %v2963_v60, 16  ;;  %v743_v6 = vshll.u32 %v2963_v60, 16  ;;  %v627_v7 = vmul.f32 %v616_v63, %v557_v61  ;;  %v4221_v52 = vld [vmem:[#allocation2 + $0xc] sm:$0xff]   ;;  %v1323_v56 = vld [vmem:[#allocation2 + $0x4] sm:$0xe]  ;;  %v3654_v63 = vld [vmem:[#allocation6 + $0x80] sm:$0xff]  }
 0x14c   : > { %v736_v10 = vor.u32 %v735_v2, %v732_v1  ;;  %v876_v17 = vrot.slane %v874_v8, 1  ;;  %3205 = vmatmul.mubr.bf16.gmra.mxu0 %v4174_v62  ;;  %3219 = vmatpush3.bf16.msra.mxu1 %v3638_v3  ;;  %v3652_v57 = vld [vmem:[#allocation6 + $0x88] sm:$0xff]   ;;  %v4231_v59 = vcombine.low %v1323_v56, %v4219_v51  ;;  %v1380_v61 = vrot.slane %v4221_v52, 1  ;;  %v3656_v1 = vld [vmem:[#allocation6 + $0x178] sm:$0xff]   ;;  %v3659_v8 = vld [vmem:[#allocation6 + $0x170] sm:$0xff]  }
 0x14d   : > { %v742_v13 = vrot.slane %v740_v5, 6  ;;  %v745_v14 = vrot.slane %v743_v6, 7  ;;  %v2964_v16 = vpack.c.bf16 %v627_v7, %v627_v7  ;;  %3220 = vmatprep.subr.bf16.mxu1 %v3881_v0  ;;  %3208 = vmatprep.mubr.msk.bf16.mxu0 %vm3882_vm0, %v3881_v0  ;;  %v4242_v5 = vld [vmem:[#allocation2 + $0x14] sm:$0xff]   ;;  %v1154_v7 = vld [vmem:[#allocation2] sm:$0xe] }
 0x14e   : > { %v737_v18 = vsel %vm4139_vm8, %v728_v9, %v736_v10  ;;  %v738_v20 = vrot.slane %v736_v10, 4  ;;  %v877_v26 = vsel %vm857_vm9, %v872_v11, %v876_v17  ;;  %3261 = vmatpush3.bf16.msra.mxu0 %v3642_v12  ;;  %v880_v41 = vor.u32 %v878_v36, %v876_v17  ;;  %v3661_v12 = vld [vmem:[#allocation6 + $0x168] sm:$0xff]   ;;  %v3670_v36 = vld [vmem:[#allocation6 + $0x118] sm:$0xff]  }
 0x14f   : > { %779 = vst [vmem:[#allocation2 + $0x20] sm:$0xf] %v737_v18  ;;  %v746_v23 = vor.u32 %v745_v14, %v742_v13  ;;  %v750_v24 = vshrl.u32 %v2964_v16, 16  ;;  %v753_v25 = vshll.u32 %v2964_v16, 16  ;;  %3165 = vmatmul.mubr.bf16.gmra.mxu1 %v877_v26  ;;  %3262 = vmatprep.subr.bf16.mxu0 %v3881_v0  ;;  %v1379_v47 = vrot.slane %v4231_v59, 1  ;;  %v3658_v18 = vld [vmem:[#allocation6 + $0x138] sm:$0xff]  }
 0x150   : > { %3221 = vmatpush3.bf16.msra.mxu1 %v3640_v22  ;;  %3168 = vmatprep.mubr.msk.bf16.mxu1 %vm3882_vm0, %v3881_v0  ;;  %v1382_v10 = vrot.slane %v4242_v5, 1  ;;  %v2869_v11 = vcombine.low %v1154_v7, %v4147_v50  ;;  %v1177_v13 = vrot.slane %v4161_v28, 1  ;;  %v3662_v22 = vld [vmem:[#allocation6 + $0x130] sm:$0xff]   ;;  %v1549_v56 = vshrl.u32 %v4231_v59, 16  ;;  %v3678_v7 = vld [vmem:[#allocation6 + $0x1b8] sm:$0xff]  }
 0x151   : > { %v747_v29 = vsel %vm4139_vm8, %v738_v20, %v746_v23  ;;  %v752_v30 = vrot.slane %v750_v24, 6  ;;  %v755_v19 = vrot.slane %v753_v25, 7  ;;  %v4194_v32 = vld [vmem:[#allocation2 + $0x18] sm:$0xff]   ;;  %v748_v33 = vrot.slane %v746_v23, 4  ;;  %3222 = vmatprep.subr.bf16.mxu1 %v3881_v0  ;;  %v3666_v24 = vld [vmem:[#allocation6 + $0x158] sm:$0xff]  }
 0x152   : > { %780 = vst [vmem:[#allocation2 + $0x24] sm:$0xf] %v747_v29  ;;  %v882_v37 = vshll.u32 %v4194_v32, 16  ;;  %3263 = vmatpush3.bf16.msra.mxu0 %v3644_v27  ;;  %v886_v48 = vshrl.u32 %v4194_v32, 16  ;;  %v1381_v4 = vsel %vm1175_vm10, %v1379_v47, %v1380_v61  ;;  %v1383_v14 = vsel %vm1175_vm10, %v1380_v61, %v1382_v10  ;;  %v3663_v20 = vld [vmem:[#allocation6 + $0x160] sm:$0xff]   ;;  %v3664_v27 = vld [vmem:[#allocation6 + $0x128] sm:$0xff]  }
 0x153   : > { %v756_v34 = vor.u32 %v755_v19, %v752_v30  ;;  %3264 = vmatprep.subr.bf16.mxu0 %v3881_v0  ;;  %v1176_v17 = vrot.slane %v2869_v11, 1  ;;  %v1179_v23 = vrot.slane %v4174_v62, 1  ;;  %v3668_v30 = vld [vmem:[#allocation6 + $0x150] sm:$0xff]   ;;  %v3667_v19 = vld [vmem:[#allocation6 + $0x120] sm:$0xff]   ;;  %v1762_v61 = vrot.slane %v4242_v5, 2  ;;  %v3680_v47 = vld [vmem:[#allocation6 + $0x1e8] sm:$0xff]  }
 0x154   : > { %3209 = vmatmul.mubr.bf16.gmra.mxu0 %v4194_v32  ;;  %3223 = vmatpush3.bf16.msra.mxu1 %v3643_v31  ;;  %v884_v42 = vrot.slane %v882_v37, 1  ;;  %v1181_v31 = vrot.slane %v4194_v32, 1 }
 0x155   : > { %v757_v39 = vsel %vm4139_vm8, %v748_v33, %v756_v34  ;;  %v758_v40 = vrot.slane %v756_v34, 4  ;;  %3212 = vmatprep.mubr.msk.bf16.mxu0 %vm3882_vm0, %v3881_v0  ;;  %3224 = vmatprep.subr.bf16.mxu1 %v3881_v0  ;;  %v1178_v50 = vsel %vm1175_vm10, %v1176_v17, %v1177_v13  ;;  %v1180_v29 = vsel %vm1175_vm10, %v1177_v13, %v1179_v23  ;;  %v3671_v33 = vld [vmem:[#allocation6 + $0x148] sm:$0xff]  }
 0x156   : > { %781 = vst [vmem:[#allocation2 + $0x28] sm:$0xf] %v757_v39  ;;  %v885_v21 = vsel %vm857_vm9, %v880_v41, %v884_v42  ;;  %3265 = vmatpush3.bf16.msra.mxu0 %v3647_v38  ;;  %v888_v53 = vor.u32 %v886_v48, %v884_v42  ;;  %v4256_v16 = vld [vmem:[#allocation2 + $0x1c] sm:$0xff]   ;;  %v1182_v37 = vsel %vm1175_vm10, %v1179_v23, %v1181_v31  ;;  %v3673_v39 = vld [vmem:[#allocation6 + $0x110] sm:$0xff]   ;;  %v1737_v42 = vld [vmem:[#allocation2 + $0x4] sm:$0xc] }
 0x157   : > { %v783_v44 = vsel %vm4062_vm5, %v758_v40, %v782_v35  ;;  %3169 = vmatmul.mubr.bf16.gmra.mxu1 %v885_v21  ;;  %3266 = vmatprep.subr.bf16.mxu0 %v3881_v0  ;;  %v1384_v28 = vrot.slane %v4256_v16, 1  ;;  %v3672_v38 = vld [vmem:[#allocation6 + $0x140] sm:$0xff]   ;;  %v3677_v48 = vld [vmem:[#allocation6 + $0x1f8] sm:$0xff]   ;;  %v1575_v17 = vshrl.u32 %v4256_v16, 16 }
 0x158   : > { %784 = vst [vmem:[#allocation2 + $0x2c] sm:$0x3] %v783_v44  ;;  %3225 = vmatpush3.bf16.msra.mxu1 %v3646_v43  ;;  %3172 = vmatprep.mubr.msk.bf16.mxu1 %vm3882_vm0, %v3881_v0  ;;  %v3675_v43 = vld [vmem:[#allocation6 + $0x108] sm:$0xff]   ;;  %v2901_v44 = vcombine.low %v1737_v42, %v4219_v51  ;;  %v1557_v51 = vshrl.u32 %v4221_v52, 16 }
 0x159   : > { %v4211_v46 = vld [vmem:[#allocation2 + $0x20] sm:$0xff]   ;;  %3226 = vmatprep.subr.bf16.mxu1 %v3881_v0  ;;  %v1385_v25 = vsel %vm1175_vm10, %v1382_v10, %v1384_v28 }
 0x15a   : > { %v890_v49 = vshll.u32 %v4211_v46, 16  ;;  %3267 = vmatpush3.bf16.msra.mxu0 %v3648_v45  ;;  %v894_v2 = vshrl.u32 %v4211_v46, 16  ;;  %v1183_v40 = vrot.slane %v4211_v46, 1  ;;  %v1760_v45 = vrot.slane %v4221_v52, 2 }
 0x15b   : > { %3324 = vmatprep.subr.bf16.mxu0 %v3881_v0 }
 0x15c   : > { %v892_v54 = vrot.slane %v890_v49, 1  ;;  %3213 = vmatmul.mubr.bf16.gmra.mxu0 %v4211_v46  ;;  %3227 = vmatpush3.bf16.msra.mxu1 %v3649_v15  ;;  %v1184_v21 = vsel %vm1175_vm10, %v1181_v31, %v1183_v40  ;;  %v3676_v46 = vld [vmem:[#allocation6 + $0x100] sm:$0xff]   ;;  %v1759_v15 = vrot.slane %v2901_v44, 2 }
 0x15d   : > { %v4223_v55 = vld [vmem:[#allocation2 + $0x28] ss:$0 sps:$4 sm:$0x11]   ;;  %3268 = vmatprep.mubr.msk.bf16.mxu0 %vm3882_vm0, %v3881_v0  ;;  %3228 = vmatprep.subr.bf16.mxu1 %v3881_v0 }
 0x15e   : > { %v893_v58 = vsel %vm857_vm9, %v888_v53, %v892_v54  ;;  %v898_v60 = vshll.u32 %v4223_v55, 16  ;;  %v896_v6 = vor.u32 %v894_v2, %v892_v54  ;;  %v4269_v26 = vld [vmem:[#allocation2 + $0x24] sm:$0xff]   ;;  %v1185_v49 = vrot.slane %v4223_v55, 1 }
 0x15f   : > { %3173 = vmatmul.mubr.bf16.gmra.mxu1 %v893_v58  ;;  %v1386_v62 = vrot.slane %v4269_v26, 1  ;;  %v3669_v35 = vld [vmem:[#allocation2 + $0x2c] ss:$0 sps:$4 sm:$0x11]   ;;  %v1560_v53 = vshll.u32 %v4221_v52, 16  ;;  %v1761_v54 = vsel %vm1758_vm11, %v1759_v15, %v1760_v45  ;;  %v1559_v52 = vrot.slane %v1557_v51, 1 }
 0x160   : > { %3229 = vmatpush3.bf16.msra.mxu1 %v3652_v57  ;;  %3176 = vmatprep.mubr.msk.bf16.mxu1 %vm3882_vm0, %v3881_v0  ;;  %v900_v3 = vrot.slane %v898_v60, 1  ;;  %v1388_v32 = vrot.slane %v3669_v35, 1  ;;  %v1552_v57 = vshll.u32 %v4231_v59, 16  ;;  %v3679_v58 = vld [vmem:[#allocation6 + $0x1f0] sm:$0xff]   ;;  %v1186_v60 = vsel %vm1175_vm10, %v1183_v40, %v1185_v49  ;;  %v3688_v35 = vld [vmem:[#allocation6 + $0x198] sm:$0xff]  }
 0x161   : > { %3230 = vmatprep.subr.bf16.mxu1 %v3881_v0  ;;  %v1387_v34 = vsel %vm1175_vm10, %v1384_v28, %v1386_v62  ;;  %v1562_v55 = vrot.slane %v1560_v53, 2  ;;  %v1551_v59 = vrot.slane %v1549_v56, 1  ;;  %v1566_v2 = vshrl.u32 %v4242_v5, 16  ;;  %v4366_v53 = vld [vmem:[#allocation2 + $0x18] sm:$0xff]  }
 0x162   : > { %v901_v9 = vsel %vm857_vm9, %v896_v6, %v900_v3  ;;  %v1389_v41 = vsel %vm1175_vm10, %v1386_v62, %v1388_v32  ;;  %v1569_v3 = vshll.u32 %v4242_v5, 16  ;;  %v1764_v5 = vrot.slane %v4256_v16, 2 }
 0x163   : > { %v1568_v10 = vrot.slane %v1566_v2, 1  ;;  %v1587_v62 = vshll.u32 %v4269_v26, 16 }
 0x164   : > { %3269 = vmatmul.mubr.bf16.vlgmr.msra.gmra.mxu0 %v1381_v4  ;;  %3231 = vmatpush3.bf16.msra.mxu1 %v3654_v63  ;;  %v1554_v63 = vrot.slane %v1552_v57, 2  ;;  %v1763_v4 = vsel %vm1758_vm11, %v1760_v45, %v1762_v61  ;;  %v1571_v11 = vrot.slane %v1569_v3, 2 }
 0x165   : > { %3272 = vmatprep.mubr.msk.bf16.mxu0 %vm3882_vm0, %v3881_v0  ;;  %3325 = vmatpush3.bf16.msra.mxu0 %v3656_v1  ;;  %v1563_v1 = vor.u32 %v1562_v55, %v1559_v52  ;;  %v1589_v32 = vrot.slane %v1587_v62, 2 }
 0x166   : > { %3288 = vmatprep.subr.bf16.mxu1 %v3881_v0  ;;  %3326 = vmatprep.subr.bf16.mxu0 %v3881_v0  ;;  %v1555_v6 = vor.u32 %v1554_v63, %v1551_v59  ;;  %v1572_v13 = vor.u32 %v1571_v11, %v1568_v10  ;;  %v2152_v59 = vshll.u32 %v4366_v53, 16  ;;  %v3695_v63 = vld [vmem:[#allocation6 + $0x180] sm:$0xff]  }
 0x167   : > { %3177 = vmatmul.mubr.bf16.gmra.mxu1 %v901_v9 }
 0x168   : > { %3232 = vmatprep.mubr.msk.bf16.mxu1 %vm3882_vm0, %v3881_v0  ;;  %v1564_v9 = vsel %vm1547_vm12, %v1555_v6, %v1563_v1  ;;  %v1573_v28 = vsel %vm1547_vm12, %v1563_v1, %v1572_v13  ;;  %v4379_v6 = vld [vmem:[#allocation2 + $0x20] sm:$0xff]  }
 0x169   : > { %3327 = vmatpush3.bf16.msra.mxu0 %v3659_v8  ;;  %v3682_v8 = vld [vmem:[#allocation6 + $0x1e0] sm:$0xff]   ;;  %v2161_v10 = vshll.u32 %v4379_v6, 16 }
 0x16a   : > { %3328 = vmatprep.subr.bf16.mxu0 %v3881_v0 }
 0x16c   : > { %3273 = vmatmul.mubr.bf16.gmra.mxu0 %v1383_v14  ;;  %v3684_v14 = vld [vmem:[#allocation6 + $0x1d8] sm:$0xff]  }
 0x16d   : > { %3276 = vmatprep.mubr.msk.bf16.mxu0 %vm3882_vm0, %v3881_v0  ;;  %3329 = vmatpush3.bf16.msra.mxu0 %v3661_v12  ;;  %v3681_v12 = vld [vmem:[#allocation6 + $0x1b0] sm:$0xff]  }
 0x16e   : > { %3330 = vmatprep.subr.bf16.mxu0 %v3881_v0 }
 0x16f   : > { %3233 = vmatmul.mubr.bf16.vlgmr.msra.gmra.mxu1 %v1178_v50  ;;  %v3683_v50 = vld [vmem:[#allocation6 + $0x1a8] sm:$0xff]  }
 0x170   : > { %3289 = vmatpush3.bf16.msra.mxu1 %v3658_v18  ;;  %3236 = vmatprep.mubr.msk.bf16.mxu1 %vm3882_vm0, %v3881_v0  ;;  %v1578_v18 = vshll.u32 %v4256_v16, 16  ;;  %v3685_v16 = vld [vmem:[#allocation6 + $0x1a0] sm:$0xff]  }
 0x171   : > { %3290 = vmatprep.subr.bf16.mxu1 %v3881_v0  ;;  %3331 = vmatpush3.bf16.msra.mxu0 %v3663_v20  ;;  %v1765_v20 = vsel %vm1758_vm11, %v1762_v61, %v1764_v5  ;;  %v2149_v61 = vshrl.u32 %v4366_v53, 16 }
 0x172   : > { %3332 = vmatprep.subr.bf16.mxu0 %v3881_v0  ;;  %v1580_v23 = vrot.slane %v1578_v18, 2  ;;  %v3697_v18 = vld [vmem:[#allocation6 + $0x238] sm:$0xff]  }
 0x173   : > { %v2151_v3 = vrot.slane %v2149_v61, 2 }
 0x174   : > { %3277 = vmatmul.mubr.bf16.gmra.mxu0 %v1385_v25  ;;  %3291 = vmatpush3.bf16.msra.mxu1 %v3662_v22  ;;  %v1577_v22 = vrot.slane %v1575_v17, 1  ;;  %v1766_v25 = vrot.slane %v4269_v26, 2 }
 0x175   : > { %3292 = vmatprep.subr.bf16.mxu1 %v3881_v0  ;;  %3280 = vmatprep.mubr.msk.bf16.mxu0 %vm3882_vm0, %v3881_v0 }
 0x176   : > { %3333 = vmatpush3.bf16.msra.mxu0 %v3666_v24  ;;  %v3686_v24 = vld [vmem:[#allocation6 + $0x1d0] sm:$0xff]   ;;  %v1767_v31 = vsel %vm1758_vm11, %v1764_v5, %v1766_v25 }
 0x177   : > { %3237 = vmatmul.mubr.bf16.gmra.mxu1 %v1180_v29  ;;  %3334 = vmatprep.subr.bf16.mxu0 %v3881_v0  ;;  %v3689_v29 = vld [vmem:[#allocation6 + $0x1c8] sm:$0xff]  }
 0x178   : > { %3293 = vmatpush3.bf16.msra.mxu1 %v3664_v27  ;;  %3240 = vmatprep.mubr.msk.bf16.mxu1 %vm3882_vm0, %v3881_v0  ;;  %v1581_v27 = vor.u32 %v1580_v23, %v1577_v22  ;;  %v3699_v23 = vld [vmem:[#allocation6 + $0x230] sm:$0xff]  }
 0x179   : > { %3294 = vmatprep.subr.bf16.mxu1 %v3881_v0 }
 0x17a   : > { %3335 = vmatpush3.bf16.msra.mxu0 %v3668_v30  ;;  %v1584_v30 = vshrl.u32 %v4269_v26, 16 }
 0x17b   : > { %3336 = vmatprep.subr.bf16.mxu0 %v3881_v0 }
 0x17c   : > { %3281 = vmatmul.mubr.bf16.gmra.mxu0 %v1387_v34  ;;  %3295 = vmatpush3.bf16.msra.mxu1 %v3667_v19  ;;  %v4344_v19 = vld [vmem:[#allocation2 + $0xc] sm:$0xf]  ;;  %v4348_v34 = vld [vmem:[#allocation2 + $0x10] sm:$0xff]  }
 0x17d   : > { %3284 = vmatprep.mubr.msk.bf16.mxu0 %vm3882_vm0, %v3881_v0  ;;  %3296 = vmatprep.subr.bf16.mxu1 %v3881_v0  ;;  %v2143_v42 = vshll.u32 %v4348_v34, 16  ;;  %v1963_v11 = vrot.slane %v4348_v34, 2 }
 0x17e   : > { %3337 = vmatpush3.bf16.msra.mxu0 %v3671_v33  ;;  %v3687_v33 = vld [vmem:[#allocation2 + $0x2c] ss:$0 sps:$4 sm:$0x33]  }
 0x17f   : > { %3241 = vmatmul.mubr.bf16.gmra.mxu1 %v1182_v37  ;;  %3338 = vmatprep.subr.bf16.mxu0 %v3881_v0  ;;  %v1582_v37 = vsel %vm1547_vm12, %v1572_v13, %v1581_v27  ;;  %v1768_v40 = vrot.slane %v3687_v33, 2  ;;  %v1596_v15 = vshll.u32 %v3687_v33, 16  ;;  %v2145_v51 = vrot.slane %v2143_v42, 3  ;;  %v3705_v42 = vld [vmem:[#allocation6 + $0x210] sm:$0xff]  }
 0x180   : > { %3297 = vmatpush3.bf16.msra.mxu1 %v3670_v36  ;;  %3244 = vmatprep.mubr.msk.bf16.mxu1 %vm3882_vm0, %v3881_v0  ;;  %v1906_v36 = vld [vmem:[#allocation2 + $0x8] sm:$0xc]  ;;  %v2163_v13 = vrot.slane %v2161_v10, 3 }
 0x181   : > { %3298 = vmatprep.subr.bf16.mxu1 %v3881_v0  ;;  %v4354_v26 = vcombine.low %v1906_v36, %v4344_v19  ;;  %v1598_v52 = vrot.slane %v1596_v15, 2  ;;  %v3702_v36 = vld [vmem:[#allocation6 + $0x220] sm:$0xff]  }
 0x182   : > { %3339 = vmatpush3.bf16.msra.mxu0 %v3672_v38  ;;  %v1586_v38 = vrot.slane %v1584_v30, 1  ;;  %v3700_v30 = vld [vmem:[#allocation6 + $0x228] sm:$0xff]   ;;  %v3708_v15 = vld [vmem:[#allocation6 + $0x200] sm:$0xff]  }
 0x183   : > { %3396 = vmatprep.subr.bf16.mxu0 %v3881_v0  ;;  %v2132_v44 = vshrl.u32 %v4354_v26, 16  ;;  %v1962_v17 = vrot.slane %v4354_v26, 2 }
 0x184   : > { %3285 = vmatmul.mubr.bf16.gmra.mxu0 %v1389_v41  ;;  %3299 = vmatpush3.bf16.msra.mxu1 %v3673_v39  ;;  %v3690_v39 = vld [vmem:[#allocation6 + $0x1c0] sm:$0xff]   ;;  %v2140_v41 = vshrl.u32 %v4348_v34, 16  ;;  %v1590_v45 = vor.u32 %v1589_v32, %v1586_v38 }
 0x185   : > { %3340 = vmatprep.mubr.msk.bf16.mxu0 %vm3882_vm0, %v3881_v0  ;;  %3300 = vmatprep.subr.bf16.mxu1 %v3881_v0  ;;  %v2134_v56 = vrot.slane %v2132_v44, 2 }
 0x186   : > { %v2142_v49 = vrot.slane %v2140_v41, 2 }
 0x187   : > { %3245 = vmatmul.mubr.bf16.gmra.mxu1 %v1184_v21  ;;  %v2135_v21 = vshll.u32 %v4354_v26, 16  ;;  %v1967_v26 = vrot.slane %v4379_v6, 2 }
 0x188   : > { %3301 = vmatpush3.bf16.msra.mxu1 %v3675_v43  ;;  %3248 = vmatprep.mubr.msk.bf16.mxu1 %vm3882_vm0, %v3881_v0  ;;  %v3691_v43 = vld [vmem:[#allocation6 + $0x190] sm:$0xff]   ;;  %v2146_v55 = vor.u32 %v2145_v51, %v2142_v49 }
 0x189   : > { %3302 = vmatprep.subr.bf16.mxu1 %v3881_v0  ;;  %v2137_v57 = vrot.slane %v2135_v21, 3  ;;  %v3706_v21 = vld [vmem:[#allocation6 + $0x208] sm:$0xff]   ;;  %v2320_v51 = vld [vmem:[#allocation2 + $0x8] sm:$0x8] }
 0x18c   : > { %3341 = vmatmul.mubr.bf16.vlgmr.msra.gmra.mxu0 %v1761_v54  ;;  %3303 = vmatpush3.bf16.msra.mxu1 %v3676_v46  ;;  %v1593_v46 = vshrl.u32 %v3687_v33, 16  ;;  %v3694_v54 = vld [vmem:[#allocation6 + $0x188] sm:$0xff]  }
 0x18d   : > { %3344 = vmatprep.mubr.msk.bf16.mxu0 %vm3882_vm0, %v3881_v0  ;;  %3397 = vmatpush3.bf16.msra.mxu0 %v3677_v48  ;;  %v1769_v48 = vsel %vm1758_vm11, %v1766_v25, %v1768_v40 }
 0x18e   : > { %3360 = vmatprep.subr.bf16.mxu1 %v3881_v0  ;;  %3398 = vmatprep.subr.bf16.mxu0 %v3881_v0 }
 0x18f   : > { %3249 = vmatmul.mubr.bf16.gmra.mxu1 %v1186_v60  ;;  %v1595_v60 = vrot.slane %v1593_v46, 1  ;;  %v3707_v46 = vld [vmem:[#allocation2 + $0x30] ss:$0 sps:$4 sm:$0x33]  }
 0x190   : > { %3304 = vmatprep.mubr.msk.bf16.mxu1 %vm3882_vm0, %v3881_v0 }
 0x191   : > { %3399 = vmatpush3.bf16.msra.mxu0 %v3679_v58  ;;  %v1591_v58 = vsel %vm1547_vm12, %v1581_v27, %v1590_v45  ;;  %v1599_v1 = vor.u32 %v1598_v52, %v1595_v60  ;;  %v2345_v60 = vrot.slane %v4366_v53, 3 }
 0x192   : > { %3400 = vmatprep.subr.bf16.mxu0 %v3881_v0 }
 0x194   : > { %3345 = vmatmul.mubr.bf16.gmra.mxu0 %v1763_v4  ;;  %v2154_v4 = vrot.slane %v2152_v59, 3 }
 0x195   : > { %3348 = vmatprep.mubr.msk.bf16.mxu0 %vm3882_vm0, %v3881_v0  ;;  %3401 = vmatpush3.bf16.msra.mxu0 %v3680_v47  ;;  %v2138_v47 = vor.u32 %v2137_v57, %v2134_v56  ;;  %v2343_v56 = vrot.slane %v4348_v34, 3 }
 0x196   : > { %3402 = vmatprep.subr.bf16.mxu0 %v3881_v0 }
 0x197   : > { %3305 = vmatmul.mubr.bf16.vlgmr.msra.gmra.mxu1 %v1564_v9  ;;  %v2147_v2 = vsel %vm2130_vm13, %v2138_v47, %v2146_v55  ;;  %v2158_v9 = vshrl.u32 %v4379_v6, 16  ;;  %v2346_v52 = vsel %vm2341_vm14, %v2343_v56, %v2345_v60 }
 0x198   : > { %3361 = vmatpush3.bf16.msra.mxu1 %v3678_v7  ;;  %3308 = vmatprep.mubr.msk.bf16.mxu1 %vm3882_vm0, %v3881_v0  ;;  %v1600_v7 = vsel %vm1547_vm12, %v1590_v45, %v1599_v1 }
 0x199   : > { %3362 = vmatprep.subr.bf16.mxu1 %v3881_v0  ;;  %3403 = vmatpush3.bf16.msra.mxu0 %v3682_v8  ;;  %v2155_v8 = vor.u32 %v2154_v4, %v2151_v3 }
 0x19a   : > { %3404 = vmatprep.subr.bf16.mxu0 %v3881_v0 }
 0x19b   : > { %v2156_v5 = vsel %vm2130_vm13, %v2146_v55, %v2155_v8 }
 0x19c   : > { %3349 = vmatmul.mubr.bf16.gmra.mxu0 %v1765_v20  ;;  %3363 = vmatpush3.bf16.msra.mxu1 %v3681_v12  ;;  %v2160_v12 = vrot.slane %v2158_v9, 2  ;;  %v1964_v20 = vsel %vm1758_vm11, %v1962_v17, %v1963_v11 }
 0x19d   : > { %3364 = vmatprep.subr.bf16.mxu1 %v3881_v0  ;;  %3352 = vmatprep.mubr.msk.bf16.mxu0 %vm3882_vm0, %v3881_v0 }
 0x19e   : > { %3405 = vmatpush3.bf16.msra.mxu0 %v3684_v14  ;;  %v4391_v14 = vld [vmem:[#allocation2 + $0x28] sm:$0xff]  }
 0x19f   : > { %3309 = vmatmul.mubr.bf16.gmra.mxu1 %v1573_v28  ;;  %3406 = vmatprep.subr.bf16.mxu0 %v3881_v0  ;;  %v2167_v28 = vshrl.u32 %v4391_v14, 16  ;;  %v2170_v22 = vshll.u32 %v4391_v14, 16  ;;  %v2349_v55 = vrot.slane %v4391_v14, 3 }
 0x1a0   : > { %3365 = vmatpush3.bf16.msra.mxu1 %v3683_v50  ;;  %3312 = vmatprep.mubr.msk.bf16.mxu1 %vm3882_vm0, %v3881_v0  ;;  %v2164_v50 = vor.u32 %v2163_v13, %v2160_v12 }
 0x1a1   : > { %3366 = vmatprep.subr.bf16.mxu1 %v3881_v0  ;;  %v2172_v27 = vrot.slane %v2170_v22, 3 }
 0x1a2   : > { %3407 = vmatpush3.bf16.msra.mxu0 %v3686_v24  ;;  %v1965_v24 = vrot.slane %v4366_v53, 2  ;;  %v2165_v25 = vsel %vm2130_vm13, %v2155_v8, %v2164_v50 }
 0x1a3   : > { %3408 = vmatprep.subr.bf16.mxu0 %v3881_v0 }
 0x1a4   : > { %3353 = vmatmul.mubr.bf16.gmra.mxu0 %v1767_v31  ;;  %3367 = vmatpush3.bf16.msra.mxu1 %v3685_v16  ;;  %v2169_v16 = vrot.slane %v2167_v28, 2  ;;  %v1966_v62 = vsel %vm1758_vm11, %v1963_v11, %v1965_v24  ;;  %v1968_v40 = vsel %vm1758_vm11, %v1965_v24, %v1967_v26 }
 0x1a5   : > { %3356 = vmatprep.mubr.msk.bf16.mxu0 %vm3882_vm0, %v3881_v0  ;;  %3368 = vmatprep.subr.bf16.mxu1 %v3881_v0 }
 0x1a6   : > { %3409 = vmatpush3.bf16.msra.mxu0 %v3689_v29  ;;  %v4404_v29 = vld [vmem:[#allocation2 + $0x30] ss:$0 sps:$4 sm:$0x77]   ;;  %v2173_v31 = vor.u32 %v2172_v27, %v2169_v16 }
 0x1a7   : > { %3313 = vmatmul.mubr.bf16.gmra.mxu1 %v1582_v37  ;;  %3410 = vmatprep.subr.bf16.mxu0 %v3881_v0  ;;  %v2176_v33 = vshrl.u32 %v4404_v29, 16  ;;  %v2351_v1 = vrot.slane %v4404_v29, 3  ;;  %v3710_v27 = vld [vmem:[#allocation8 + $0x38] sm:$0xff]  }
 0x1a8   : > { %3369 = vmatpush3.bf16.msra.mxu1 %v3688_v35  ;;  %3316 = vmatprep.mubr.msk.bf16.mxu1 %vm3882_vm0, %v3881_v0  ;;  %v2179_v35 = vshll.u32 %v4404_v29, 16  ;;  %v2174_v37 = vsel %vm2130_vm13, %v2164_v50, %v2173_v31 }
 0x1a9   : > { %3370 = vmatprep.subr.bf16.mxu1 %v3881_v0  ;;  %v2178_v38 = vrot.slane %v2176_v33, 2  ;;  %v2352_v4 = vsel %vm2341_vm14, %v2349_v55, %v2351_v1 }
 0x1aa   : > { %3411 = vmatpush3.bf16.msra.mxu0 %v3690_v39  ;;  %v2181_v32 = vrot.slane %v2179_v35, 3  ;;  %v3704_v39 = vld [vmem:[#allocation6 + $0x218] sm:$0xff]   ;;  %v3711_v35 = vld [vmem:[#allocation8 + $0x30] sm:$0xff]  }
 0x1ab   : > { %3468 = vmatprep.subr.bf16.mxu0 %v3881_v0 }
 0x1ac   : > { %3357 = vmatmul.mubr.bf16.gmra.mxu0 %v1769_v48  ;;  %3371 = vmatpush3.bf16.msra.mxu1 %v3691_v43  ;;  %v2182_v41 = vor.u32 %v2181_v32, %v2178_v38  ;;  %v1969_v43 = vrot.slane %v4391_v14, 2  ;;  %v1971_v48 = vrot.slane %v3707_v46, 2  ;;  %v3712_v32 = vld [vmem:[#allocation8 + $0x28] sm:$0xff]  }
 0x1ad   : > { %3412 = vmatprep.mubr.msk.bf16.mxu0 %vm3882_vm0, %v3881_v0  ;;  %3372 = vmatprep.subr.bf16.mxu1 %v3881_v0 }
 0x1ae   : > { %v2183_v44 = vsel %vm2130_vm13, %v2173_v31, %v2182_v41  ;;  %v1970_v45 = vsel %vm1758_vm11, %v1967_v26, %v1969_v43  ;;  %v1972_v49 = vsel %vm1758_vm11, %v1969_v43, %v1971_v48 }
 0x1af   : > { %3317 = vmatmul.mubr.bf16.gmra.mxu1 %v1591_v58 }
 0x1b0   : > { %3373 = vmatpush3.bf16.msra.mxu1 %v3694_v54  ;;  %3320 = vmatprep.mubr.msk.bf16.mxu1 %vm3882_vm0, %v3881_v0  ;;  %v2933_v54 = vcombine.low %v2320_v51, %v4344_v19  ;;  %v2347_v19 = vrot.slane %v4379_v6, 3 }
 0x1b1   : > { %3374 = vmatprep.subr.bf16.mxu1 %v3881_v0 }
 0x1b2   : > { %v2342_v57 = vrot.slane %v2933_v54, 3  ;;  %v2348_v34 = vsel %vm2341_vm14, %v2345_v60, %v2347_v19  ;;  %v2350_v53 = vsel %vm2341_vm14, %v2347_v19, %v2349_v55  ;;  %v3715_v55 = vld [vmem:[#allocation8 + $0x10] sm:$0xff]  }
 0x1b4   : > { %3413 = vmatmul.mubr.bf16.vlgmr.msra.gmra.mxu0 %v2147_v2  ;;  %3375 = vmatpush3.bf16.msra.mxu1 %v3695_v63  ;;  %v2344_v58 = vsel %vm2341_vm14, %v2342_v57, %v2343_v56 }
 0x1b5   : > { %3416 = vmatprep.mubr.msk.bf16.mxu0 %vm3882_vm0, %v3881_v0  ;;  %3432 = vmatprep.subr.bf16.mxu1 %v3881_v0 }
 0x1b6   : > { %3469 = vmatpush3.bf16.msra.mxu0 %v3710_v27 }
 0x1b7   : > { %3321 = vmatmul.mubr.bf16.gmra.mxu1 %v1600_v7  ;;  %3470 = vmatprep.subr.bf16.mxu0 %v3881_v0 }
 0x1b8   : > { %3376 = vmatprep.mubr.msk.bf16.mxu1 %vm3882_vm0, %v3881_v0 }
 0x1ba   : > { %3471 = vmatpush3.bf16.msra.mxu0 %v3711_v35 }
 0x1bb   : > { %3472 = vmatprep.subr.bf16.mxu0 %v3881_v0 }
 0x1bc   : > { %3417 = vmatmul.mubr.bf16.gmra.mxu0 %v2156_v5 }
 0x1bd   : > { %3420 = vmatprep.mubr.msk.bf16.mxu0 %vm3882_vm0, %v3881_v0 }
 0x1be   : > { %3473 = vmatpush3.bf16.msra.mxu0 %v3712_v32 }
 0x1bf   : > { %3377 = vmatmul.mubr.bf16.vlgmr.msra.gmra.mxu1 %v1964_v20  ;;  %3474 = vmatprep.subr.bf16.mxu0 %v3881_v0 }
 0x1c0   : > { %3433 = vmatpush3.bf16.msra.mxu1 %v3697_v18  ;;  %3380 = vmatprep.mubr.msk.bf16.mxu1 %vm3882_vm0, %v3881_v0 }
 0x1c1   : > { %3434 = vmatprep.subr.bf16.mxu1 %v3881_v0 }
 0x1c4   : > { %3421 = vmatmul.mubr.bf16.gmra.mxu0 %v2165_v25  ;;  %3435 = vmatpush3.bf16.msra.mxu1 %v3699_v23 }
 0x1c5   : > { %3436 = vmatprep.subr.bf16.mxu1 %v3881_v0  ;;  %3424 = vmatprep.mubr.msk.bf16.mxu0 %vm3882_vm0, %v3881_v0 }
 0x1c7   : > { %3381 = vmatmul.mubr.bf16.gmra.mxu1 %v1966_v62 }
 0x1c8   : > { %3437 = vmatpush3.bf16.msra.mxu1 %v3700_v30  ;;  %3384 = vmatprep.mubr.msk.bf16.mxu1 %vm3882_vm0, %v3881_v0 }
 0x1c9   : > { %3438 = vmatprep.subr.bf16.mxu1 %v3881_v0 }
 0x1cc   : > { %3425 = vmatmul.mubr.bf16.gmra.mxu0 %v2174_v37  ;;  %3439 = vmatpush3.bf16.msra.mxu1 %v3702_v36 }
 0x1cd   : > { %3428 = vmatprep.mubr.msk.bf16.mxu0 %vm3882_vm0, %v3881_v0  ;;  %3440 = vmatprep.subr.bf16.mxu1 %v3881_v0 }
 0x1cf   : > { %3385 = vmatmul.mubr.bf16.gmra.mxu1 %v1968_v40 }
 0x1d0   : > { %3441 = vmatpush3.bf16.msra.mxu1 %v3704_v39  ;;  %3388 = vmatprep.mubr.msk.bf16.mxu1 %vm3882_vm0, %v3881_v0 }
 0x1d1   : > { %3442 = vmatprep.subr.bf16.mxu1 %v3881_v0 }
 0x1d4   : > { %3429 = vmatmul.mubr.bf16.gmra.mxu0 %v2183_v44  ;;  %3443 = vmatpush3.bf16.msra.mxu1 %v3705_v42  ;;  %v3713_v44 = vld [vmem:[#allocation8 + $0x20] sm:$0xff]  }
 0x1d5   : > { %3444 = vmatprep.subr.bf16.mxu1 %v3881_v0  ;;  %3484 = vmatprep.mubr.msk.bf16.mxu0 %vm3882_vm0, %v3881_v0 }
 0x1d6   : > { %3475 = vmatpush3.bf16.msra.mxu0 %v3713_v44 }
 0x1d7   : > { %3389 = vmatmul.mubr.bf16.gmra.mxu1 %v1970_v45  ;;  %3476 = vmatprep.subr.bf16.mxu0 %v3881_v0 }
 0x1d8   : > { %3445 = vmatpush3.bf16.msra.mxu1 %v3706_v21  ;;  %3392 = vmatprep.mubr.msk.bf16.mxu1 %vm3882_vm0, %v3881_v0 }
 0x1d9   : > { %3446 = vmatprep.subr.bf16.mxu1 %v3881_v0 }
 0x1dc   : > { %3447 = vmatpush3.bf16.msra.mxu1 %v3708_v15 }
 0x1dd   : > { %3504 = vmatprep.subr.bf16.mxu1 %v3881_v0 }
 0x1df   : > { %3393 = vmatmul.mubr.bf16.gmra.mxu1 %v1972_v49  ;;  %v3714_v49 = vld [vmem:[#allocation8 + $0x18] sm:$0xff]  }
 0x1e0   : > { %3448 = vmatprep.mubr.msk.bf16.mxu1 %vm3882_vm0, %v3881_v0  ;;  %3477 = vmatpush3.bf16.msra.mxu0 %v3714_v49 }
 0x1e1   : > { %3478 = vmatprep.subr.bf16.mxu0 %v3881_v0 }
 0x1e4   : > { %3479 = vmatpush3.bf16.msra.mxu0 %v3715_v55 }
 0x1e5   : > { %3480 = vmatprep.subr.bf16.mxu0 %v3881_v0 }
 0x1e7   : > { %3449 = vmatmul.mubr.bf16.vlgmr.msra.gmra.mxu1 %v2344_v58 }
 0x1e8   : > { %3452 = vmatprep.mubr.msk.bf16.mxu1 %vm3882_vm0, %v3881_v0  ;;  %3512 = vmatpush3.bf16.msra.mxu1 %v3710_v27 }
 0x1e9   : > { %3505 = vmatprep.subr.bf16.mxu1 %v3881_v0 }
 0x1ec   : > { %3513 = vmatpush3.bf16.msra.mxu1 %v3711_v35 }
 0x1ed   : > { %3506 = vmatprep.subr.bf16.mxu1 %v3881_v0 }
 0x1ef   : > { %3453 = vmatmul.mubr.bf16.gmra.mxu1 %v2346_v52 }
 0x1f0   : > { %3456 = vmatprep.mubr.msk.bf16.mxu1 %vm3882_vm0, %v3881_v0  ;;  %3514 = vmatpush3.bf16.msra.mxu1 %v3712_v32 }
 0x1f1   : > { %3507 = vmatprep.subr.bf16.mxu1 %v3881_v0 }
 0x1f4   : > { %3515 = vmatpush3.bf16.msra.mxu1 %v3713_v44 }
 0x1f5   : > { %3508 = vmatprep.subr.bf16.mxu1 %v3881_v0 }
 0x1f7   : > { %3457 = vmatmul.mubr.bf16.gmra.mxu1 %v2348_v34 }
 0x1f8   : > { %3460 = vmatprep.mubr.msk.bf16.mxu1 %vm3882_vm0, %v3881_v0  ;;  %3516 = vmatpush3.bf16.msra.mxu1 %v3714_v49 }
 0x1f9   : > { %3509 = vmatprep.subr.bf16.mxu1 %v3881_v0 }
 0x1fc   : > { %v1115_v61 = vpop.f32.mrf.mxu0  ;;  %3517 = vmatpush3.bf16.msra.mxu1 %v3715_v55 }
 0x1fd   : > { %3510 = vmatprep.subr.bf16.mxu1 %v3881_v0 }
 0x1fe   : > { %v3198_v59 = vpop.f32.mrf.mxu0 }
 0x1ff   : > { %3461 = vmatmul.mubr.bf16.gmra.mxu1 %v2350_v53 }
 0x200   : > { %v1118_v63 = vpop.f32.mrf.mxu0  ;;  %3464 = vmatprep.mubr.msk.bf16.mxu1 %vm3882_vm0, %v3881_v0 }
 0x202   : > { %v3199_v47 = vpop.f32.mrf.mxu0 }
 0x204   : > { %v1123_v2 = vpop.f32.mrf.mxu0 }
 0x206   : > { %v3202_v3 = vpop.f32.mrf.mxu0 }
 0x207   : > { %v989_v6 = vpop.f32.mrf.mxu1  ;;  %3465 = vmatmul.mubr.bf16.gmra.mxu1 %v2352_v4  ;;  %v3716_v4 = vld [vmem:[#allocation8 + $0x8] sm:$0xff]  }
 0x208   : > { %v1126_v7 = vpop.f32.mrf.mxu0  ;;  %v4456_v8 = vadd.f32 %v1115_v61, %v989_v6  ;;  %3496 = vmatprep.mubr.msk.bf16.mxu1 %vm3882_vm0, %v3881_v0  ;;  %3481 = vmatpush3.bf16.msra.mxu0 %v3716_v4 }
 0x209   : > { %v3162_v9 = vpop.f32.mrf.mxu1  ;;  %3518 = vmatpush3.bf16.msra.mxu1 %v3716_v4  ;;  %3482 = vmatprep.subr.bf16.mxu0 %v3881_v0 }
 0x20a   : > { %v3203_v10 = vpop.f32.mrf.mxu0  ;;  %3511 = vmatprep.subr.bf16.mxu1 %v3881_v0 }
 0x20b   : > { %v992_v11 = vpop.f32.mrf.mxu1  ;;  %v3717_v10 = vld [vmem:[#allocation8] sm:$0xff]  }
 0x20c   : > { %v1131_v5 = vpop.f32.mrf.mxu0  ;;  %v4460_v12 = vadd.f32 %v1118_v63, %v992_v11  ;;  %3483 = vmatpush3.bf16.msra.mxu0 %v3717_v10 }
 0x20d   : > { %v3163_v13 = vpop.f32.mrf.mxu1  ;;  %3519 = vmatpush3.bf16.msra.mxu1 %v3717_v10 }
 0x20e   : > { %v3206_v14 = vpop.f32.mrf.mxu0 }
 0x20f   : > { %v997_v17 = vpop.f32.mrf.mxu1 }
 0x210   : > { %v1134_v18 = vpop.f32.mrf.mxu0  ;;  %v4462_v20 = vadd.f32 %v1123_v2, %v997_v17 }
 0x211   : > { %v3166_v50 = vpop.f32.mrf.mxu1 }
 0x212   : > { %v3207_v28 = vpop.f32.mrf.mxu0 }
 0x213   : > { %v1000_v22 = vpop.f32.mrf.mxu1 }
 0x214   : > { %v1139_v23 = vpop.f32.mrf.mxu0  ;;  %v4464_v24 = vadd.f32 %v1126_v7, %v1000_v22 }
 0x215   : > { %v3167_v25 = vpop.f32.mrf.mxu1 }
 0x216   : > { %v3210_v16 = vpop.f32.mrf.mxu0 }
 0x217   : > { %v1005_v29 = vpop.f32.mrf.mxu1 }
 0x218   : > { %v1142_v30 = vpop.f32.mrf.mxu0  ;;  %v4466_v62 = vadd.f32 %v1131_v5, %v1005_v29 }
 0x219   : > { %v3170_v31 = vpop.f32.mrf.mxu1 }
 0x21a   : > { %v3211_v33 = vpop.f32.mrf.mxu0 }
 0x21b   : > { %v1008_v36 = vpop.f32.mrf.mxu1 }
 0x21c   : > { %v1147_v26 = vpop.f32.mrf.mxu0  ;;  %v4470_v37 = vadd.f32 %v1134_v18, %v1008_v36 }
 0x21d   : > { %v3171_v38 = vpop.f32.mrf.mxu1 }
 0x21e   : > { %v3214_v39 = vpop.f32.mrf.mxu0 }
 0x21f   : > { %v1013_v40 = vpop.f32.mrf.mxu1 }
 0x220   : > { %v1150_v41 = vpop.f32.mrf.mxu0  ;;  %v4474_v42 = vadd.f32 %v1139_v23, %v1013_v40 }
 0x221   : > { %v3174_v43 = vpop.f32.mrf.mxu1 }
 0x222   : > { %v3215_v21 = vpop.f32.mrf.mxu0 }
 0x223   : > { %v1016_v45 = vpop.f32.mrf.mxu1 }
 0x224   : > { %v1477_v46 = vpop.f32.mrf.mxu0  ;;  %v4478_v15 = vadd.f32 %v1142_v30, %v1016_v45 }
 0x225   : > { %v3175_v48 = vpop.f32.mrf.mxu1 }
 0x226   : > { %v3270_v51 = vpop.f32.mrf.mxu0 }
 0x227   : > { %v1021_v54 = vpop.f32.mrf.mxu1 }
 0x228   : > { %v1480_v56 = vpop.f32.mrf.mxu0  ;;  %v4482_v57 = vadd.f32 %v1147_v26, %v1021_v54 }
 0x229   : > { %v3178_v58 = vpop.f32.mrf.mxu1 }
 0x22a   : > { %v3271_v60 = vpop.f32.mrf.mxu0 }
 0x22b   : > { %v1024_v52 = vpop.f32.mrf.mxu1 }
 0x22c   : > { %v1485_v19 = vpop.f32.mrf.mxu0  ;;  %v4486_v34 = vadd.f32 %v1150_v41, %v1024_v52 }
 0x22d   : > { %v3179_v61 = vpop.f32.mrf.mxu1 }
 0x22e   : > { %v3274_v59 = vpop.f32.mrf.mxu0 }
 0x22f   : > { %v1274_v53 = vpop.f32.mrf.mxu1 }
 0x230   : > { %v1488_v63 = vpop.f32.mrf.mxu0  ;;  %v1313_v47 = vadd.f32 %v1274_v53, %v4456_v8 }
 0x231   : > { %v3234_v1 = vpop.f32.mrf.mxu1 }
 0x232   : > { %v3275_v2 = vpop.f32.mrf.mxu0  ;;  %v4491_v3 = vadd.f32 %v1477_v46, %v1313_v47 }
 0x233   : > { %v1277_v6 = vpop.f32.mrf.mxu1 }
 0x234   : > { %v1493_v7 = vpop.f32.mrf.mxu0  ;;  %v1314_v9 = vadd.f32 %v1277_v6, %v4460_v12 }
 0x235   : > { %v3235_v11 = vpop.f32.mrf.mxu1 }
 0x236   : > { %v3278_v5 = vpop.f32.mrf.mxu0  ;;  %v1517_v13 = vadd.f32 %v1480_v56, %v1314_v9 }
 0x237   : > { %v1282_v8 = vpop.f32.mrf.mxu1 }
 0x238   : > { %v1496_v14 = vpop.f32.mrf.mxu0  ;;  %v1315_v17 = vadd.f32 %v1282_v8, %v4462_v20 }
 0x239   : > { %v3238_v18 = vpop.f32.mrf.mxu1 }
 0x23a   : > { %v3279_v50 = vpop.f32.mrf.mxu0  ;;  %v1518_v28 = vadd.f32 %v1485_v19, %v1315_v17 }
 0x23b   : > { %v1285_v12 = vpop.f32.mrf.mxu1 }
 0x23c   : > { %v1501_v22 = vpop.f32.mrf.mxu0  ;;  %v1316_v23 = vadd.f32 %v1285_v12, %v4464_v24 }
 0x23d   : > { %v3239_v25 = vpop.f32.mrf.mxu1 }
 0x23e   : > { %v3282_v16 = vpop.f32.mrf.mxu0  ;;  %v1519_v27 = vadd.f32 %v1488_v63, %v1316_v23 }
 0x23f   : > { %v1290_v29 = vpop.f32.mrf.mxu1 }
 0x240   : > { %v1504_v30 = vpop.f32.mrf.mxu0  ;;  %v1317_v31 = vadd.f32 %v1290_v29, %v4466_v62 }
 0x241   : > { %v3242_v33 = vpop.f32.mrf.mxu1 }
 0x242   : > { %v3283_v35 = vpop.f32.mrf.mxu0  ;;  %v1520_v36 = vadd.f32 %v1493_v7, %v1317_v31 }
 0x243   : > { %v1293_v20 = vpop.f32.mrf.mxu1 }
 0x244   : > { %v1509_v26 = vpop.f32.mrf.mxu0  ;;  %v1318_v38 = vadd.f32 %v1293_v20, %v4470_v37 }
 0x245   : > { %v3243_v32 = vpop.f32.mrf.mxu1 }
 0x246   : > { %v3286_v39 = vpop.f32.mrf.mxu0  ;;  %v1521_v40 = vadd.f32 %v1496_v14, %v1318_v38 }
 0x247   : > { %v1298_v41 = vpop.f32.mrf.mxu1 }
 0x248   : > { %v1512_v43 = vpop.f32.mrf.mxu0  ;;  %v1319_v24 = vadd.f32 %v1298_v41, %v4474_v42 }
 0x249   : > { %v3246_v44 = vpop.f32.mrf.mxu1 }
 0x24a   : > { %v3287_v21 = vpop.f32.mrf.mxu0  ;;  %v1522_v45 = vadd.f32 %v1501_v22, %v1319_v24 }
 0x24b   : > { %v1301_v46 = vpop.f32.mrf.mxu1 }
 0x24c   : > { %v1857_v48 = vpop.f32.mrf.mxu0  ;;  %v1320_v62 = vadd.f32 %v1301_v46, %v4478_v15 }
 0x24d   : > { %v3247_v49 = vpop.f32.mrf.mxu1 }
 0x24e   : > { %v3342_v51 = vpop.f32.mrf.mxu0  ;;  %v1523_v54 = vadd.f32 %v1504_v30, %v1320_v62 }
 0x24f   : > { %v1306_v56 = vpop.f32.mrf.mxu1 }
 0x250   : > { %v1860_v58 = vpop.f32.mrf.mxu0  ;;  %v1321_v37 = vadd.f32 %v1306_v56, %v4482_v57 }
 0x251   : > { %v3250_v60 = vpop.f32.mrf.mxu1 }
 0x252   : > { %v3343_v52 = vpop.f32.mrf.mxu0  ;;  %v1524_v19 = vadd.f32 %v1509_v26, %v1321_v37 }
 0x253   : > { %v1309_v55 = vpop.f32.mrf.mxu1 }
 0x254   : > { %v1865_v61 = vpop.f32.mrf.mxu0  ;;  %v1322_v42 = vadd.f32 %v1309_v55, %v4486_v34 }
 0x255   : > { %v3251_v59 = vpop.f32.mrf.mxu1 }
 0x256   : > { %v3346_v53 = vpop.f32.mrf.mxu0  ;;  %v1525_v63 = vadd.f32 %v1512_v43, %v1322_v42 }
 0x257   : > { %v1688_v47 = vpop.f32.mrf.mxu1 }
 0x258   : > { %v1868_v1 = vpop.f32.mrf.mxu0  ;;  %v1727_v15 = vadd.f32 %v1688_v47, %v4491_v3 }
 0x259   : > { %v3306_v2 = vpop.f32.mrf.mxu1 }
 0x25a   : > { %v3347_v4 = vpop.f32.mrf.mxu0  ;;  %v4505_v6 = vadd.f32 %v1857_v48, %v1727_v15 }
 0x25b   : > { %v1691_v7 = vpop.f32.mrf.mxu1 }
 0x25c   : > { %v1873_v57 = vpop.f32.mrf.mxu0  ;;  %v1728_v9 = vadd.f32 %v1691_v7, %v1517_v13 }
 0x25d   : > { %v3307_v10 = vpop.f32.mrf.mxu1 }
 0x25e   : > { %v3350_v11 = vpop.f32.mrf.mxu0  ;;  %v4507_v5 = vadd.f32 %v1860_v58, %v1728_v9 }
 0x25f   : > { %v1696_v8 = vpop.f32.mrf.mxu1 }
 0x260   : > { %v1876_v34 = vpop.f32.mrf.mxu0  ;;  %v1729_v14 = vadd.f32 %v1696_v8, %v1518_v28 }
 0x261   : > { %v3310_v17 = vpop.f32.mrf.mxu1 }
 0x262   : > { %v3351_v18 = vpop.f32.mrf.mxu0  ;;  %v4509_v50 = vadd.f32 %v1865_v61, %v1729_v14 }
 0x263   : > { %v1699_v12 = vpop.f32.mrf.mxu1 }
 0x264   : > { %v1881_v3 = vpop.f32.mrf.mxu0  ;;  %v1730_v22 = vadd.f32 %v1699_v12, %v1519_v27 }
 0x265   : > { %v3311_v23 = vpop.f32.mrf.mxu1 }
 0x266   : > { %v3354_v25 = vpop.f32.mrf.mxu0  ;;  %v4511_v16 = vadd.f32 %v1868_v1, %v1730_v22 }
 0x267   : > { %v1704_v29 = vpop.f32.mrf.mxu1 }
 0x268   : > { %v1884_v13 = vpop.f32.mrf.mxu0  ;;  %v1731_v30 = vadd.f32 %v1704_v29, %v1520_v36 }
 0x269   : > { %v3314_v31 = vpop.f32.mrf.mxu1 }
 0x26a   : > { %v3355_v33 = vpop.f32.mrf.mxu0  ;;  %v4513_v35 = vadd.f32 %v1873_v57, %v1731_v30 }
 0x26b   : > { %v1707_v20 = vpop.f32.mrf.mxu1 }
 0x26c   : > { %v1889_v28 = vpop.f32.mrf.mxu0  ;;  %v1732_v26 = vadd.f32 %v1707_v20, %v1521_v40 }
 0x26d   : > { %v3315_v38 = vpop.f32.mrf.mxu1 }
 0x26e   : > { %v3358_v32 = vpop.f32.mrf.mxu0  ;;  %v4515_v39 = vadd.f32 %v1876_v34, %v1732_v26 }
 0x26f   : > { %v1712_v41 = vpop.f32.mrf.mxu1 }
 0x270   : > { %v1892_v27 = vpop.f32.mrf.mxu0  ;;  %v1733_v43 = vadd.f32 %v1712_v41, %v1522_v45 }
 0x271   : > { %v3318_v24 = vpop.f32.mrf.mxu1 }
 0x272   : > { %v3359_v44 = vpop.f32.mrf.mxu0  ;;  %v4517_v21 = vadd.f32 %v1881_v3, %v1733_v43 }
 0x273   : > { %v1715_v46 = vpop.f32.mrf.mxu1 }
 0x274   : > { %v2271_v36 = vpop.f32.mrf.mxu0  ;;  %v1734_v48 = vadd.f32 %v1715_v46, %v1523_v54 }
 0x275   : > { %v3319_v62 = vpop.f32.mrf.mxu1 }
 0x276   : > { %v3414_v49 = vpop.f32.mrf.mxu0  ;;  %v4519_v51 = vadd.f32 %v1884_v13, %v1734_v48  ;;  %v4542_v48 = vld [vmem:[%s4665_s5] ss:$0 sm:$0xff] }
 0x277   : > { %v1720_v56 = vpop.f32.mrf.mxu1 }
 0x278   : > { %v2274_v40 = vpop.f32.mrf.mxu0  ;;  %v1735_v58 = vadd.f32 %v1720_v56, %v1524_v19 }
 0x279   : > { %v3322_v37 = vpop.f32.mrf.mxu1 }
 0x27a   : > { %v3415_v60 = vpop.f32.mrf.mxu0  ;;  %v4521_v52 = vadd.f32 %v1889_v28, %v1735_v58 }
 0x27b   : > { %v1723_v55 = vpop.f32.mrf.mxu1 }
 0x27c   : > { %v2279_v45 = vpop.f32.mrf.mxu0  ;;  %v1736_v61 = vadd.f32 %v1723_v55, %v1525_v63 }
 0x27d   : > { %v3323_v42 = vpop.f32.mrf.mxu1 }
 0x27e   : > { %v3418_v59 = vpop.f32.mrf.mxu0  ;;  %v4523_v53 = vadd.f32 %v1892_v27, %v1736_v61 }
 0x27f   : > { %v2060_v47 = vpop.f32.mrf.mxu1 }
 0x280   : > { %v2282_v54 = vpop.f32.mrf.mxu0  ;;  %v2099_v32 = vadd.f32 %v2060_v47, %v4505_v6 }
 0x281   : > { %v3378_v1 = vpop.f32.mrf.mxu1 }
 0x282   : > { %v3419_v15 = vpop.f32.mrf.mxu0  ;;  %v2310_v24 = vadd.f32 %v2271_v36, %v2099_v32 }
 0x283   : > { %v2063_v2 = vpop.f32.mrf.mxu1 }
 0x284   : > { %v2287_v4 = vpop.f32.mrf.mxu0  ;;  %v2100_v43 = vadd.f32 %v2063_v2, %v4507_v5 }
 0x285   : > { %v3379_v7 = vpop.f32.mrf.mxu1 }
 0x286   : > { %v3422_v57 = vpop.f32.mrf.mxu0  ;;  %v2311_v56 = vadd.f32 %v2274_v40, %v2100_v43 }
 0x287   : > { %v2068_v19 = vpop.f32.mrf.mxu1 }
 0x288   : > { %v4525_v9 = vpop.f32.mrf.mxu0  ;;  %v2101_v49 = vadd.f32 %v2068_v19, %v4509_v50 }
 0x289   : > { %v3382_v10 = vpop.f32.mrf.mxu1 }
 0x28a   : > { %v3423_v11 = vpop.f32.mrf.mxu0  ;;  %v2312_v36 = vadd.f32 %v2279_v45, %v2101_v49 }
 0x28b   : > { %v2071_v8 = vpop.f32.mrf.mxu1 }
 0x28c   : > { %v4527_v34 = vpop.f32.mrf.mxu0  ;;  %v2102_v55 = vadd.f32 %v2071_v8, %v4511_v16 }
 0x28d   : > { %v3383_v63 = vpop.f32.mrf.mxu1 }
 0x28e   : > { %v3426_v14 = vpop.f32.mrf.mxu0  ;;  %v2313_v50 = vadd.f32 %v2282_v54, %v2102_v55 }
 0x28f   : > { %v2076_v17 = vpop.f32.mrf.mxu1 }
 0x290   : > { %v4529_v18 = vpop.f32.mrf.mxu0  ;;  %v2103_v15 = vadd.f32 %v2076_v17, %v4513_v35 }
 0x291   : > { %v3386_v12 = vpop.f32.mrf.mxu1 }
 0x292   : > { %v3427_v3 = vpop.f32.mrf.mxu0  ;;  %v2314_v10 = vadd.f32 %v2287_v4, %v2103_v15 }
 0x293   : > { %v2079_v22 = vpop.f32.mrf.mxu1 }
 0x294   : > { %v4531_v23 = vpop.f32.mrf.mxu0  ;;  %v2104_v16 = vadd.f32 %v2079_v22, %v4515_v39 }
 0x295   : > { %v3387_v25 = vpop.f32.mrf.mxu1 }
 0x296   : > { %v3430_v29 = vpop.f32.mrf.mxu0  ;;  %v2315_v17 = vadd.f32 %v4525_v9, %v2104_v16 }
 0x297   : > { %v2084_v13 = vpop.f32.mrf.mxu1 }
 0x298   : > { %v4533_v30 = vpop.f32.mrf.mxu0  ;;  %v2105_v54 = vadd.f32 %v2084_v13, %v4517_v21 }
 0x299   : > { %v3390_v31 = vpop.f32.mrf.mxu1 }
 0x29a   : > { %v3431_v33 = vpop.f32.mrf.mxu0  ;;  %v2316_v22 = vadd.f32 %v4527_v34, %v2105_v54 }
 0x29b   : > { %v2087_v20 = vpop.f32.mrf.mxu1 }
 0x29c   : > { %v2106_v39 = vadd.f32 %v2087_v20, %v4519_v51 }
 0x29d   : > { %v3391_v28 = vpop.f32.mrf.mxu1 }
 0x29e   : > { %v2317_v32 = vadd.f32 %v4529_v18, %v2106_v39 }
 0x29f   : > { %v2092_v26 = vpop.f32.mrf.mxu1 }
 0x2a1   : > { %v3394_v38 = vpop.f32.mrf.mxu1 }
 0x2a2   : > { %v2107_v38 = vadd.f32 %v2092_v26, %v4521_v52 }
 0x2a3   : > { %v4536_v41 = vpop.f32.mrf.mxu1 }
 0x2a4   : > { %v2108_v20 = vadd.f32 %v4536_v41, %v4523_v53 }
 0x2a5   : > { %v3395_v27 = vpop.f32.mrf.mxu1 }
 0x2a7   : > { %v2440_v44 = vpop.f32.mrf.mxu1 }
 0x2a8   : > { %v2479_v46 = vadd.f32 %v2440_v44, %v2310_v24 }
 0x2a9   : > { %v3450_v62 = vpop.f32.mrf.mxu1 }
 0x2aa   : > { %v2496_v6 = vadd.f32 %v4542_v48, %v2479_v46  ;;  %v2318_v46 = vadd.f32 %v4531_v23, %v2107_v38  ;;  %v3726_v38 = vld [vmem:[%s4085_s18 + $0x18] sm:$0xff]  }
 0x2ab   : > { %v2443_v58 = vpop.f32.mrf.mxu1 }
 0x2ac   : > { %v2480_v37 = vadd.f32 %v2443_v58, %v2311_v56  ;;  %v2506_v42 = vmax.f32 %v2496_v6, 0.0  ;;  %v2319_v58 = vadd.f32 %v4533_v30, %v2108_v20  ;;  %v4578_v30 = vld [vmem:[%s4667_s7] ss:$0 sm:$0xff]  ;;  %v2672_v20 = vunpack.c.h.bf16 %v3726_v38 }
 0x2ad   : > { %v3451_v60 = vpop.f32.mrf.mxu1 }
 0x2ae   : > { %v2497_v5 = vadd.f32 %v4542_v48, %v2480_v37 }
 0x2af   : > { %v2448_v61 = vpop.f32.mrf.mxu1 }
 0x2b0   : > { %v2507_v59 = vmax.f32 %v2497_v5, 0.0  ;;  %v2481_v47 = vadd.f32 %v2448_v61, %v2312_v36  ;;  %v3723_v36 = vld [vmem:[%s4085_s18] sm:$0xff]  }
 0x2b1   : > { %v3454_v1 = vpop.f32.mrf.mxu1  ;;  %v2665_v61 = vunpack.c.l.bf16 %v3723_v36 }
 0x2b2   : > { %v2516_v2 = vpack.c.bf16 %v2507_v59, %v2506_v42  ;;  %v2498_v7 = vadd.f32 %v4542_v48, %v2481_v47  ;;  %v2666_v47 = vunpack.c.h.bf16 %v3723_v36 }
 0x2b3   : > { %v2451_v40 = vpop.f32.mrf.mxu1 }
 0x2b4   : > { %v2482_v57 = vadd.f32 %v2451_v40, %v2313_v50  ;;  %3485 = vmatmul.mubr.bf16.vlgmr.msra.gmra.mxu0 %v2516_v2  ;;  %v2508_v8 = vmax.f32 %v2498_v7, 0.0  ;;  %v3724_v7 = vld [vmem:[%s4085_s18 + $0x8] sm:$0xff]  }
 0x2b5   : > { %v3455_v19 = vpop.f32.mrf.mxu1  ;;  %3488 = vmatprep.mubr.msk.bf16.mxu0 %vm3882_vm0, %v3881_v0 }
 0x2b6   : > { %v2499_v45 = vadd.f32 %v4542_v48, %v2482_v57  ;;  %v2667_v57 = vunpack.c.l.bf16 %v3724_v7 }
 0x2b7   : > { %v2456_v11 = vpop.f32.mrf.mxu1 }
 0x2b8   : > { %v2509_v63 = vmax.f32 %v2499_v45, 0.0  ;;  %v2483_v35 = vadd.f32 %v2456_v11, %v2314_v10 }
 0x2b9   : > { %v3458_v14 = vpop.f32.mrf.mxu1 }
 0x2ba   : > { %v2517_v12 = vpack.c.bf16 %v2509_v63, %v2508_v8  ;;  %v2500_v25 = vadd.f32 %v4542_v48, %v2483_v35  ;;  %v2668_v8 = vunpack.c.h.bf16 %v3724_v7 }
 0x2bb   : > { %v2459_v3 = vpop.f32.mrf.mxu1 }
 0x2bc   : > { %v2484_v29 = vadd.f32 %v2459_v3, %v2315_v17  ;;  %3489 = vmatmul.mubr.bf16.gmra.mxu0 %v2517_v12  ;;  %v2510_v21 = vmax.f32 %v2500_v25, 0.0  ;;  %v3725_v12 = vld [vmem:[%s4085_s18 + $0x10] sm:$0xff]  }
 0x2bd   : > { %v3459_v31 = vpop.f32.mrf.mxu1  ;;  %3492 = vmatprep.mubr.msk.bf16.mxu0 %vm3882_vm0, %v3881_v0  ;;  %v2669_v3 = vunpack.c.l.bf16 %v3725_v12 }
 0x2be   : > { %v2501_v4 = vadd.f32 %v4542_v48, %v2484_v29 }
 0x2bf   : > { %v2464_v33 = vpop.f32.mrf.mxu1 }
 0x2c0   : > { %v2511_v13 = vmax.f32 %v2501_v4, 0.0  ;;  %v2485_v9 = vadd.f32 %v2464_v33, %v2316_v22  ;;  %v2670_v22 = vunpack.c.h.bf16 %v3725_v12 }
 0x2c1   : > { %v3462_v28 = vpop.f32.mrf.mxu1 }
 0x2c2   : > { %v2518_v27 = vpack.c.bf16 %v2511_v13, %v2510_v21  ;;  %v2502_v24 = vadd.f32 %v4542_v48, %v2485_v9 }
 0x2c3   : > { %v2467_v43 = vpop.f32.mrf.mxu1 }
 0x2c4   : > { %v2486_v44 = vadd.f32 %v2467_v43, %v2317_v32  ;;  %3493 = vmatmul.mubr.bf16.gmra.mxu0 %v2518_v27  ;;  %v2512_v49 = vmax.f32 %v2502_v24, 0.0  ;;  %v2671_v32 = vunpack.c.l.bf16 %v3726_v38 }
 0x2c5   : > { %v3463_v51 = vpop.f32.mrf.mxu1 }
 0x2c6   : > { %v2503_v34 = vadd.f32 %v4542_v48, %v2486_v44 }
 0x2c7   : > { %v2472_v62 = vpop.f32.mrf.mxu1 }
 0x2c8   : > { %v2513_v56 = vmax.f32 %v2503_v34, 0.0  ;;  %v2487_v52 = vadd.f32 %v2472_v62, %v2318_v46 }
 0x2c9   : > { %v3466_v18 = vpop.f32.mrf.mxu1 }
 0x2ca   : > { %v2519_v26 = vpack.c.bf16 %v2513_v56, %v2512_v49  ;;  %v2504_v37 = vadd.f32 %v4542_v48, %v2487_v52  ;;  %v3727_v52 = vld [vmem:[%s4085_s18 + $0x20] sm:$0xff]  }
 0x2cb   : > { %v2475_v6 = vpop.f32.mrf.mxu1  ;;  %v2673_v18 = vunpack.c.l.bf16 %v3727_v52 }
 0x2cc   : > { %v2488_v60 = vadd.f32 %v2475_v6, %v2319_v58  ;;  %3497 = vmatmul.mubr.bf16.vlgmr.msra.gmra.mxu1 %v2519_v26  ;;  %v2514_v41 = vmax.f32 %v2504_v37, 0.0 }
 0x2cd   : > { %v3467_v53 = vpop.f32.mrf.mxu1  ;;  %3500 = vmatprep.mubr.msk.bf16.mxu1 %vm3882_vm0, %v3881_v0 }
 0x2ce   : > { %v2505_v23 = vadd.f32 %v4542_v48, %v2488_v60  ;;  %v2674_v53 = vunpack.c.h.bf16 %v3727_v52 }
 0x2d0   : > { %v2515_v55 = vmax.f32 %v2505_v23, 0.0 }
 0x2d2   : > { %v2520_v5 = vpack.c.bf16 %v2515_v55, %v2514_v41 }
 0x2d4   : > { %3501 = vmatmul.mubr.bf16.gmra.mxu1 %v2520_v5 }
 0x374   : > { %v2626_v42 = vpop.f32.mrf.mxu0 }
 0x375   : > { %v2627_v0 = vadd.f32 %v4578_v30, %v2626_v42 }
 0x376   : > { %v3486_v59 = vpop.f32.mrf.mxu0 }
 0x377   : > { %v2675_v48 = vadd.f32 %v2665_v61, %v2627_v0 }
 0x378   : > { %v2629_v1 = vpop.f32.mrf.mxu0 }
 0x379   : > { %v2685_v15 = vmax.f32 %v2675_v48, 0.0  ;;  %v2630_v2 = vadd.f32 %v4578_v30, %v2629_v1 }
 0x37a   : > { %v3487_v50 = vpop.f32.mrf.mxu0 }
 0x37b   : > { %2695 = vst [vmem:[%s4585_s21] sm:$0xff] %v2685_v15  ;;  %v2676_v40 = vadd.f32 %v2666_v47, %v2630_v2 }
 0x37c   : > { %v2634_v19 = vpop.f32.mrf.mxu0 }
 0x37d   : > { %v2686_v16 = vmax.f32 %v2676_v40, 0.0  ;;  %v2635_v45 = vadd.f32 %v4578_v30, %v2634_v19 }
 0x37e   : > { %v3490_v10 = vpop.f32.mrf.mxu0 }
 0x37f   : > { %2696 = vst [vmem:[%s4585_s21 + $0x8] sm:$0xff] %v2686_v16  ;;  %v2677_v11 = vadd.f32 %v2667_v57, %v2635_v45 }
 0x380   : > { %v2637_v63 = vpop.f32.mrf.mxu0 }
 0x381   : > { %v2687_v35 = vmax.f32 %v2677_v11, 0.0  ;;  %v2638_v14 = vadd.f32 %v4578_v30, %v2637_v63 }
 0x382   : > { %v3491_v54 = vpop.f32.mrf.mxu0 }
 0x383   : > { %2697 = vst [vmem:[%s4585_s21 + $0x10] sm:$0xff] %v2687_v35  ;;  %v2678_v17 = vadd.f32 %v2668_v8, %v2638_v14 }
 0x384   : > { %v2642_v25 = vpop.f32.mrf.mxu0 }
 0x385   : > { %v2688_v29 = vmax.f32 %v2678_v17, 0.0  ;;  %v2643_v31 = vadd.f32 %v4578_v30, %v2642_v25 }
 0x386   : > { %v3494_v39 = vpop.f32.mrf.mxu0 }
 0x387   : > { %2698 = vst [vmem:[%s4585_s21 + $0x18] sm:$0xff] %v2688_v29  ;;  %v2679_v4 = vadd.f32 %v2669_v3, %v2643_v31 }
 0x388   : > { %v2645_v33 = vpop.f32.mrf.mxu0 }
 0x389   : > { %v2689_v21 = vmax.f32 %v2679_v4, 0.0  ;;  %v2646_v13 = vadd.f32 %v4578_v30, %v2645_v33 }
 0x38a   : > { %v3495_v9 = vpop.f32.mrf.mxu0 }
 0x38b   : > { %2699 = vst [vmem:[%s4585_s21 + $0x20] sm:$0xff] %v2689_v21  ;;  %v2680_v28 = vadd.f32 %v2670_v22, %v2646_v13 }
 0x38c   : > { %v2650_v27 = vpop.f32.mrf.mxu1 }
 0x38d   : > { %v2690_v43 = vmax.f32 %v2680_v28, 0.0  ;;  %v2651_v24 = vadd.f32 %v4578_v30, %v2650_v27 }
 0x38e   : > { %v3498_v44 = vpop.f32.mrf.mxu1 }
 0x38f   : > { %2700 = vst [vmem:[%s4585_s21 + $0x28] sm:$0xff] %v2690_v43  ;;  %v2681_v51 = vadd.f32 %v2671_v32, %v2651_v24 }
 0x390   : > { %v2653_v34 = vpop.f32.mrf.mxu1 }
 0x391   : > { %v2691_v46 = vmax.f32 %v2681_v51, 0.0  ;;  %v2654_v62 = vadd.f32 %v4578_v30, %v2653_v34 }
 0x392   : > { %v3499_v49 = vpop.f32.mrf.mxu1 }
 0x393   : > { %2701 = vst [vmem:[%s4585_s21 + $0x30] sm:$0xff] %v2691_v46  ;;  %v2682_v56 = vadd.f32 %v2672_v20, %v2654_v62 }
 0x394   : > { %v2658_v26 = vpop.f32.mrf.mxu1 }
 0x395   : > { %v2692_v58 = vmax.f32 %v2682_v56, 0.0  ;;  %v2659_v6 = vadd.f32 %v4578_v30, %v2658_v26 }
 0x396   : > { %v3502_v37 = vpop.f32.mrf.mxu1 }
 0x397   : > { %2702 = vst [vmem:[%s4585_s21 + $0x38] sm:$0xff] %v2692_v58  ;;  %v2683_v60 = vadd.f32 %v2673_v18, %v2659_v6 }
 0x398   : > { %v2661_v23 = vpop.f32.mrf.mxu1 }
 0x399   : > { %v2693_v41 = vmax.f32 %v2683_v60, 0.0  ;;  %v2662_v55 = vadd.f32 %v4578_v30, %v2661_v23 }
 0x39a   : > { %v3503_v5 = vpop.f32.mrf.mxu1 }
 0x39b   : > { %2703 = vst [vmem:[%s4585_s21 + $0x40] sm:$0xff] %v2693_v41  ;;  %v2684_v36 = vadd.f32 %v2674_v53, %v2662_v55 }
 0x39d   : > { %v2694_v61 = vmax.f32 %v2684_v36, 0.0 }
 0x39f   : > { %2704 = vst [vmem:[%s4585_s21 + $0x48] sm:$0xff] %v2694_v61 }
 0x3a0   : > { %3819 = shalt.err (!%p3816_p0)
}
 0x3a1   : > { %s3820_s24 = scalar_lea.hbm %s4615_s12, 1280  ;;  %s3824_s21 = scalar_lea.hbm %s4668_s8, 2560 }
 0x3a2   : > { %p3821_p6 = scmp.ne.s32.totalorder %s4615_s12, %s3820_s24  ;;  %p3825_p1 = scmp.lt.s32.totalorder %s4615_s12, %s4668_s8 }
 0x3a3   : > { %p3826_p5 = scmp.lt.s32.totalorder %s3824_s21, %s3820_s24 }
 0x3a4   : > { %p3822_p9 = pnand %p3821_p6, %p4685_p3 }
 0x3a5   : > { %p3827_p10 = por %p3826_p5, %p3825_p1 }
 0x3a6   : > { %p3823_p13 = pneg %p3822_p9 }
 0x3a8   : > { %p3828_p12 = pnand %p3827_p10, %p3823_p13 }
 0x3aa   : > { %3831 = shalt.err (!%p3828_p12)
}
 0x3ab   : > { %s3885_s25 = smov 128   ;;  %s3886_s9 = smov 8  }
 0x3ac   : > { %3535 = dma.vmem_to_hbm [thread:$0]  (%p4685_p3), %s4610_s19, 1280, %s4615_s12, %s4620_s17, %s3885_s25, %s3885_s25, %s3886_s9  }
 0x3ad PF: > { %p3557_p2 = scmp.ge.s32.totalorder %s3874_s30, 2  ;;  %s2734_s20 = sand.u32 1, %s3862_s27  }
 0x3ae   : > { %p4686_p4 = scmp.ne.s32.totalorder %s4672_s16, 0  ;;  %s2735_s22 = scalar_lea.sflag [#allocation5], %s2734_s20 }
 0x3b0   : > { %p3548_p7 = pnand %p3557_p2, %p4686_p4 }
 0x3b2   : > { %p3549_p8 = pneg %p3548_p7 }
 0x3b4   : > { %3857 = dma.done.wait (%p3549_p8), %s2735_s22, 1280  }
 0x3b5   : > { %3859 = vsyncadd (%p3549_p8), %s2735_s22, 4294966016  ;;  %p20_p11 = scmp.ge.s32.totalorder %s3957_s11, 4   ;;  %s4687_s27 = smov %s3866_s28 }
 0x3b6   : > { %s4688_s28 = smov %s3870_s29  ;;  %s4689_s29 = smov %s3968_s14 }
 0x3b7   : > { %s4690_s30 = smov %s3957_s11  ;;  %22 = sbr.rel (!%p20_p11) target bundleno = 5 (0x5), region = 108 }
 0x3bc   :  { %2740 = vsyncpa [#allocation4], 1 }
 0x3bd   :  { %2742 = vsyncpa [#allocation4 + $0x1], 1 }
 0x3be   :  { %2743 = vsyncpa [#allocation7], 1 }
 0x3bf   :  { %2744 = vsyncpa [#allocation5], 1 }
 0x3c0   :  { %2746 = vsyncpa [#allocation5 + $0x1], 1 }

</bundles_post_ra>
